<compile_context>
chip_gen: v5e
topology: v5e:2x2
jax: 0.10.0
libtpu: 0.0.40
codegen_flags: <defaults>
</compile_context>

<pallas_src>
import functools

import jax
import jax.numpy as jnp
import numpy as np
from jax.experimental import pallas as pl
from jax.experimental.pallas import tpu as pltpu

LANE = 128          # TPU lane width; feature dims padded to multiples of this
N_HEADS = 3         # f, g, h


def _round_up(x, m):
    return (x + m - 1) // m * m


# --------------------------------------------------------------------------
# Kernel
# --------------------------------------------------------------------------
def _mu_fused_kernel(x_ref, w1_ref, b1_ref, wh_ref, bh_ref, w4_ref, b4_ref,
                     out_ref, *, hp, n_hidden):
    """Fused 3-head MuZero MLP on one batch tile (everything stays in VMEM).

    x_ref  : [tile_m, d_pad]      f32   (cast to bf16 here)
    w1_ref : [d_pad, 3*hp]        bf16  merged layer-1 weights (f|g|h)
    b1_ref : [1, 3*hp]            f32
    wh_ref : [n_hidden*3, hp, hp] bf16  hidden-layer weights (layer-major, head-minor)
    bh_ref : [n_hidden*3, 1, hp]  f32
    w4_ref : [3, hp, out_pack]    bf16  final weights, heads packed into disjoint lanes
    b4_ref : [1, out_pack]        f32   packed final biases
    out_ref: [tile_m, out_pack]   bf16  packed (f | g | h) outputs
    """
    x = x_ref[...].astype(jnp.bfloat16)

    # Layer 1: one wide MXU issue for all three heads (shared input x).
    a = jnp.dot(x, w1_ref[...], preferred_element_type=jnp.float32) + b1_ref[...]
    a = jnp.maximum(a, 0.0).astype(jnp.bfloat16)              # [tile_m, 3*hp]

    # Hidden layers: per-head 128x128 dots on lane-aligned slices (no extra MACs).
    for l in range(n_hidden):
        cols = []
        for k in range(N_HEADS):
            ah = a[:, k * hp:(k + 1) * hp]                    # aligned lane slice
            z = (jnp.dot(ah, wh_ref[l * N_HEADS + k],
                         preferred_element_type=jnp.float32)
                 + bh_ref[l * N_HEADS + k])
            cols.append(jnp.maximum(z, 0.0))
        a = jnp.concatenate(cols, axis=-1).astype(jnp.bfloat16)   # [tile_m, 3*hp]

    # Final layer: all three heads accumulated into ONE lane-dense output tile.
    z = b4_ref[...]
    for k in range(N_HEADS):
        z = z + jnp.dot(a[:, k * hp:(k + 1) * hp], w4_ref[k],
                        preferred_element_type=jnp.float32)
    out_ref[...] = z.astype(out_ref.dtype)


# --------------------------------------------------------------------------
# One-time weight packing (cache the result across forward calls)
# --------------------------------------------------------------------------
def pack_mu_params(f_params, g_params, h_params):
    """Pad/cast/pack the three heads' parameters once.

    Each *_params is a list of (W [in, out] f32, b [out] f32) pairs.
    Returns (packed_arrays, meta).
    """
    heads = (f_params, g_params, h_params)
    n_layers = len(f_params)
    n_hidden = n_layers - 2

    d_in = heads[0][0][0].shape[0]
    d_pad = _round_up(d_in, LANE)
    hidden = heads[0][0][0].shape[1]
    hp = _round_up(hidden, LANE)

    out_dims = [p[-1][0].shape[1] for p in heads]
    offs = [0, out_dims[0], out_dims[0] + out_dims[1]]
    out_pack = _round_up(sum(out_dims), LANE)

    # Merged layer 1: [d_pad, 3*hp]  (head k in cols [k*hp, k*hp+hidden)).
    w1 = jnp.zeros((d_pad, N_HEADS * hp), jnp.bfloat16)
    b1 = jnp.zeros((1, N_HEADS * hp), jnp.float32)
    for k, p in enumerate(heads):
        w, b = p[0]
        w1 = w1.at[:d_in, k * hp:k * hp + w.shape[1]].set(w.astype(jnp.bfloat16))
        b1 = b1.at[0, k * hp:k * hp + b.shape[0]].set(b.astype(jnp.float32))

    # Hidden layers: [n_hidden*3, hp, hp].
    wh = jnp.zeros((n_hidden * N_HEADS, hp, hp), jnp.bfloat16)
    bh = jnp.zeros((n_hidden * N_HEADS, 1, hp), jnp.float32)
    for l in range(n_hidden):
        for k, p in enumerate(heads):
            w, b = p[l + 1]
            idx = l * N_HEADS + k
            wh = wh.at[idx, :w.shape[0], :w.shape[1]].set(w.astype(jnp.bfloat16))
            bh = bh.at[idx, 0, :b.shape[0]].set(b.astype(jnp.float32))

    # Final layer packed into disjoint output lanes: [3, hp, out_pack].
    w4 = jnp.zeros((N_HEADS, hp, out_pack), jnp.bfloat16)
    b4 = jnp.zeros((1, out_pack), jnp.float32)
    for k, p in enumerate(heads):
        w, b = p[-1]
        w4 = w4.at[k, :w.shape[0], offs[k]:offs[k] + w.shape[1]].set(
            w.astype(jnp.bfloat16))
        b4 = b4.at[0, offs[k]:offs[k] + b.shape[0]].set(b.astype(jnp.float32))

    packed = (w1, b1, wh, bh, w4, b4)
    meta = dict(d_in=d_in, d_pad=d_pad, hp=hp, n_hidden=n_hidden,
                out_dims=out_dims, offs=offs, out_pack=out_pack)
    return packed, meta


# --------------------------------------------------------------------------
# Forward wrapper
# --------------------------------------------------------------------------
def mu_model_forward(x, packed, meta, *, tile_m=512):
    """Fused MuModel.forward: returns (f(x), g(x), h(x)).

    x      : [B, D_in] float32
    packed : output of pack_mu_params (pad/cast done once, reused per call)
    """
    B, d_in = x.shape
    d_pad, hp = meta["d_pad"], meta["hp"]
    n_hidden, out_pack = meta["n_hidden"], meta["out_pack"]

    # Keep >= 2 batch tiles when possible (v7x: shard across its 2 TCs),
    # while using large tiles (per-grid-step overhead ~0.35 us).
    tm = min(tile_m, max(8, _round_up(pl.cdiv(B, 2), 8)))
    b_pad = _round_up(B, tm)

    # Avoid a host-side pad/cast pass over x when shapes are already aligned;
    # the f32->bf16 cast happens inside the kernel.
    if (b_pad != B) or (d_pad != d_in):
        x_in = jnp.zeros((b_pad, d_pad), x.dtype).at[:B, :d_in].set(x)
    else:
        x_in = x

    grid = (b_pad // tm,)
    x_spec = pl.BlockSpec((tm, d_pad), lambda i: (i, 0))
    # Weights/biases: full-array blocks with constant index_maps -> VMEM-resident
    # across grid steps (no per-tile weight DMA).  Their double-buffered VMEM
    # footprint is < 1 MiB, so default pipelining is fine.
    w_specs = [pl.BlockSpec(p.shape, lambda i, nd=p.ndim: (0,) * nd) for p in packed]
    out_spec = pl.BlockSpec((tm, out_pack), lambda i: (i, 0))

    kernel = functools.partial(_mu_fused_kernel, hp=hp, n_hidden=n_hidden)

    out = pl.pallas_call(
        kernel,
        out_shape=jax.ShapeDtypeStruct((b_pad, out_pack), jnp.bfloat16),
        grid_spec=pltpu.PrefetchScalarGridSpec(
            num_scalar_prefetch=0,
            grid=grid,
            in_specs=[x_spec] + w_specs,
            out_specs=out_spec,
        ),
        compiler_params=pltpu.CompilerParams(
            dimension_semantics=("parallel",),      # batch tiles across TCs (v7x)
            vmem_limit_bytes=32 * 1024 * 1024,      # headroom vs v5e's 16 MiB default
        ),
    )(x_in, *packed)

    offs, out_dims = meta["offs"], meta["out_dims"]
    f_o = out[:B, offs[0]:offs[0] + out_dims[0]].astype(jnp.float32)
    g_o = out[:B, offs[1]:offs[1] + out_dims[1]].astype(jnp.float32)
    h_o = out[:B, offs[2]:offs[2] + out_dims[2]].astype(jnp.float32)
    return f_o, g_o, h_o


# --------------------------------------------------------------------------
# Pure-JAX reference (same bf16-matmul / f32-accumulate recipe)
# --------------------------------------------------------------------------
def _ref_head(x, params):
    a = x
    for i, (w, b) in enumerate(params):
        z = jnp.dot(a.astype(jnp.bfloat16), w.astype(jnp.bfloat16),
                    preferred_element_type=jnp.float32) + b
        a = jnp.maximum(z, 0.0) if i < len(params) - 1 else z
    return a


if __name__ == "__main__":
    # Small shapes consistent with MuModel(observation_dim, action_dim,
    # state_dim, N, K, layer_count=4, layer_dim=64).
    observation_dim, action_dim, state_dim, N = 16, 4, 8, 8
    layer_dim = 64
    d_in = N * observation_dim       # 128 (x feeds all three heads)
    batch = 256                      # -> two 128-row batch tiles, no padding

    key = jax.random.PRNGKey(0)

    def init_head(key, dims):
        params = []
        for i in range(len(dims) - 1):
            key, kw, kb = jax.random.split(key, 3)
            w = jax.random.normal(kw, (dims[i], dims[i + 1]), jnp.float32)
            w = w / jnp.sqrt(jnp.float32(dims[i]))
            b = 0.01 * jax.random.normal(kb, (dims[i + 1],), jnp.float32)
            params.append((w, b))
        return key, params

    key, f_params = init_head(key, [d_in, layer_dim, layer_dim, layer_dim, action_dim + 1])
    key, g_params = init_head(key, [d_in, layer_dim, layer_dim, layer_dim, state_dim + 1])
    key, h_params = init_head(key, [d_in, layer_dim, layer_dim, layer_dim, state_dim])
    key, kx = jax.random.split(key)
    x = jax.random.normal(kx, (batch, d_in), jnp.float32)

    # Pack/pad/cast the weights ONCE; reuse across forward calls.
    packed, meta = pack_mu_params(f_params, g_params, h_params)
    packed = jax.block_until_ready(packed)

    fwd = jax.jit(lambda xx: mu_model_forward(xx, packed, meta, tile_m=512))
    f_o, g_o, h_o = jax.block_until_ready(fwd(x))

    f_r = _ref_head(x, f_params)
    g_r = _ref_head(x, g_params)
    h_r = _ref_head(x, h_params)

    for name, got, want in (("f", f_o, f_r), ("g", g_o, g_r), ("h", h_o, h_r)):
        np.testing.assert_allclose(np.asarray(got), np.asarray(want),
                                   rtol=2e-2, atol=2e-2, err_msg=name)

    print("KERNEL_OK")
</pallas_src>

<mosaic_0001>
module attributes {stable_mosaic.version = 11 : i64} {
  func.func @_mu_fused_kernel(%arg0: i32, %arg1: memref<128x128xf32, #tpu.memory_space<vmem>>, %arg2: memref<128x384xbf16, #tpu.memory_space<vmem>>, %arg3: memref<1x384xf32, #tpu.memory_space<vmem>>, %arg4: memref<6x128x128xbf16, #tpu.memory_space<vmem>>, %arg5: memref<6x1x128xf32, #tpu.memory_space<vmem>>, %arg6: memref<3x128x128xbf16, #tpu.memory_space<vmem>>, %arg7: memref<1x128xf32, #tpu.memory_space<vmem>>, %arg8: memref<128x128xbf16, #tpu.memory_space<vmem>>) attributes {dimension_semantics = [#tpu.dimension_semantics<parallel>], iteration_bounds = array<i64: 2>, scalar_prefetch = 0 : i64, scratch_operands = 0 : i64, tpu.core_type = #tpu.core_type<tc>, window_params = [{transform_indices = @transform_0, window_bounds = array<i64: 128, 128>}, {pipeline_mode = #tpu.pipeline_mode<synchronous>, transform_indices = @transform_1, window_bounds = array<i64: 128, 384>}, {pipeline_mode = #tpu.pipeline_mode<synchronous>, transform_indices = @transform_2, window_bounds = array<i64: 1, 384>}, {pipeline_mode = #tpu.pipeline_mode<synchronous>, transform_indices = @transform_3, window_bounds = array<i64: 6, 128, 128>}, {pipeline_mode = #tpu.pipeline_mode<synchronous>, transform_indices = @transform_4, window_bounds = array<i64: 6, 1, 128>}, {pipeline_mode = #tpu.pipeline_mode<synchronous>, transform_indices = @transform_5, window_bounds = array<i64: 3, 128, 128>}, {pipeline_mode = #tpu.pipeline_mode<synchronous>, transform_indices = @transform_6, window_bounds = array<i64: 1, 128>}, {transform_indices = @transform_7, window_bounds = array<i64: 128, 128>}]} {
    %c0 = arith.constant 0 : index
    %c0_0 = arith.constant 0 : index
    %0 = vector.load %arg1[%c0, %c0_0] : memref<128x128xf32, #tpu.memory_space<vmem>>, vector<128x128xf32>
    %1 = arith.truncf %0 : vector<128x128xf32> to vector<128x128xbf16>
    %c0_1 = arith.constant 0 : index
    %c0_2 = arith.constant 0 : index
    %2 = vector.load %arg2[%c0_1, %c0_2] : memref<128x384xbf16, #tpu.memory_space<vmem>>, vector<128x384xbf16>
    %cst = arith.constant dense<0.000000e+00> : vector<128x384xf32>
    %3 = tpu.matmul %1, %2, %cst {dimension_numbers = #tpu.dot_dimension_numbers<[1], [0], [0], [1], [0, 0, 1, 1], [], []>} : vector<128x128xbf16>, vector<128x384xbf16>, vector<128x384xf32> -> vector<128x384xf32>
    %c0_3 = arith.constant 0 : index
    %c0_4 = arith.constant 0 : index
    %4 = vector.load %arg3[%c0_3, %c0_4] : memref<1x384xf32, #tpu.memory_space<vmem>>, vector<1x384xf32>
    %5 = vector.broadcast %4 : vector<1x384xf32> to vector<128x384xf32>
    %6 = arith.addf %3, %5 : vector<128x384xf32>
    %cst_5 = arith.constant 0.000000e+00 : f32
    %7 = vector.broadcast %cst_5 : f32 to vector<128x384xf32>
    %8 = arith.maximumf %6, %7 : vector<128x384xf32>
    %9 = arith.truncf %8 : vector<128x384xf32> to vector<128x384xbf16>
    %10 = vector.extract_strided_slice %9 {offsets = [0, 0], sizes = [128, 128], strides = [1, 1]} : vector<128x384xbf16> to vector<128x128xbf16>
    %c0_6 = arith.constant 0 : index
    %c0_7 = arith.constant 0 : index
    %c0_8 = arith.constant 0 : index
    %11 = vector.load %arg4[%c0_6, %c0_7, %c0_8] : memref<6x128x128xbf16, #tpu.memory_space<vmem>>, vector<1x128x128xbf16>
    %12 = vector.shape_cast %11 : vector<1x128x128xbf16> to vector<128x128xbf16>
    %cst_9 = arith.constant dense<0.000000e+00> : vector<128x128xf32>
    %13 = tpu.matmul %10, %12, %cst_9 {dimension_numbers = #tpu.dot_dimension_numbers<[1], [0], [0], [1], [0, 0, 1, 1], [], []>} : vector<128x128xbf16>, vector<128x128xbf16>, vector<128x128xf32> -> vector<128x128xf32>
    %c0_10 = arith.constant 0 : index
    %c0_11 = arith.constant 0 : index
    %c0_12 = arith.constant 0 : index
    %14 = vector.load %arg5[%c0_10, %c0_11, %c0_12] : memref<6x1x128xf32, #tpu.memory_space<vmem>>, vector<1x1x128xf32>
    %15 = vector.shape_cast %14 : vector<1x1x128xf32> to vector<1x128xf32>
    %16 = vector.broadcast %15 : vector<1x128xf32> to vector<128x128xf32>
    %17 = arith.addf %13, %16 : vector<128x128xf32>
    %cst_13 = arith.constant 0.000000e+00 : f32
    %18 = vector.broadcast %cst_13 : f32 to vector<128x128xf32>
    %19 = arith.maximumf %17, %18 : vector<128x128xf32>
    %20 = vector.extract_strided_slice %9 {offsets = [0, 128], sizes = [128, 128], strides = [1, 1]} : vector<128x384xbf16> to vector<128x128xbf16>
    %c1 = arith.constant 1 : index
    %c0_14 = arith.constant 0 : index
    %c0_15 = arith.constant 0 : index
    %21 = vector.load %arg4[%c1, %c0_14, %c0_15] : memref<6x128x128xbf16, #tpu.memory_space<vmem>>, vector<1x128x128xbf16>
    %22 = vector.shape_cast %21 : vector<1x128x128xbf16> to vector<128x128xbf16>
    %cst_16 = arith.constant dense<0.000000e+00> : vector<128x128xf32>
    %23 = tpu.matmul %20, %22, %cst_16 {dimension_numbers = #tpu.dot_dimension_numbers<[1], [0], [0], [1], [0, 0, 1, 1], [], []>} : vector<128x128xbf16>, vector<128x128xbf16>, vector<128x128xf32> -> vector<128x128xf32>
    %c1_17 = arith.constant 1 : index
    %c0_18 = arith.constant 0 : index
    %c0_19 = arith.constant 0 : index
    %24 = vector.load %arg5[%c1_17, %c0_18, %c0_19] : memref<6x1x128xf32, #tpu.memory_space<vmem>>, vector<1x1x128xf32>
    %25 = vector.shape_cast %24 : vector<1x1x128xf32> to vector<1x128xf32>
    %26 = vector.broadcast %25 : vector<1x128xf32> to vector<128x128xf32>
    %27 = arith.addf %23, %26 : vector<128x128xf32>
    %cst_20 = arith.constant 0.000000e+00 : f32
    %28 = vector.broadcast %cst_20 : f32 to vector<128x128xf32>
    %29 = arith.maximumf %27, %28 : vector<128x128xf32>
    %30 = vector.extract_strided_slice %9 {offsets = [0, 256], sizes = [128, 128], strides = [1, 1]} : vector<128x384xbf16> to vector<128x128xbf16>
    %c2 = arith.constant 2 : index
    %c0_21 = arith.constant 0 : index
    %c0_22 = arith.constant 0 : index
    %31 = vector.load %arg4[%c2, %c0_21, %c0_22] : memref<6x128x128xbf16, #tpu.memory_space<vmem>>, vector<1x128x128xbf16>
    %32 = vector.shape_cast %31 : vector<1x128x128xbf16> to vector<128x128xbf16>
    %cst_23 = arith.constant dense<0.000000e+00> : vector<128x128xf32>
    %33 = tpu.matmul %30, %32, %cst_23 {dimension_numbers = #tpu.dot_dimension_numbers<[1], [0], [0], [1], [0, 0, 1, 1], [], []>} : vector<128x128xbf16>, vector<128x128xbf16>, vector<128x128xf32> -> vector<128x128xf32>
    %c2_24 = arith.constant 2 : index
    %c0_25 = arith.constant 0 : index
    %c0_26 = arith.constant 0 : index
    %34 = vector.load %arg5[%c2_24, %c0_25, %c0_26] : memref<6x1x128xf32, #tpu.memory_space<vmem>>, vector<1x1x128xf32>
    %35 = vector.shape_cast %34 : vector<1x1x128xf32> to vector<1x128xf32>
    %36 = vector.broadcast %35 : vector<1x128xf32> to vector<128x128xf32>
    %37 = arith.addf %33, %36 : vector<128x128xf32>
    %cst_27 = arith.constant 0.000000e+00 : f32
    %38 = vector.broadcast %cst_27 : f32 to vector<128x128xf32>
    %39 = arith.maximumf %37, %38 : vector<128x128xf32>
    %40 = tpu.concatenate %19, %29, %39 in 1 : vector<128x128xf32>, vector<128x128xf32>, vector<128x128xf32> -> vector<128x384xf32>
    %41 = arith.truncf %40 : vector<128x384xf32> to vector<128x384xbf16>
    %42 = vector.extract_strided_slice %41 {offsets = [0, 0], sizes = [128, 128], strides = [1, 1]} : vector<128x384xbf16> to vector<128x128xbf16>
    %c3 = arith.constant 3 : index
    %c0_28 = arith.constant 0 : index
    %c0_29 = arith.constant 0 : index
    %43 = vector.load %arg4[%c3, %c0_28, %c0_29] : memref<6x128x128xbf16, #tpu.memory_space<vmem>>, vector<1x128x128xbf16>
    %44 = vector.shape_cast %43 : vector<1x128x128xbf16> to vector<128x128xbf16>
    %cst_30 = arith.constant dense<0.000000e+00> : vector<128x128xf32>
    %45 = tpu.matmul %42, %44, %cst_30 {dimension_numbers = #tpu.dot_dimension_numbers<[1], [0], [0], [1], [0, 0, 1, 1], [], []>} : vector<128x128xbf16>, vector<128x128xbf16>, vector<128x128xf32> -> vector<128x128xf32>
    %c3_31 = arith.constant 3 : index
    %c0_32 = arith.constant 0 : index
    %c0_33 = arith.constant 0 : index
    %46 = vector.load %arg5[%c3_31, %c0_32, %c0_33] : memref<6x1x128xf32, #tpu.memory_space<vmem>>, vector<1x1x128xf32>
    %47 = vector.shape_cast %46 : vector<1x1x128xf32> to vector<1x128xf32>
    %48 = vector.broadcast %47 : vector<1x128xf32> to vector<128x128xf32>
    %49 = arith.addf %45, %48 : vector<128x128xf32>
    %cst_34 = arith.constant 0.000000e+00 : f32
    %50 = vector.broadcast %cst_34 : f32 to vector<128x128xf32>
    %51 = arith.maximumf %49, %50 : vector<128x128xf32>
    %52 = vector.extract_strided_slice %41 {offsets = [0, 128], sizes = [128, 128], strides = [1, 1]} : vector<128x384xbf16> to vector<128x128xbf16>
    %c4 = arith.constant 4 : index
    %c0_35 = arith.constant 0 : index
    %c0_36 = arith.constant 0 : index
    %53 = vector.load %arg4[%c4, %c0_35, %c0_36] : memref<6x128x128xbf16, #tpu.memory_space<vmem>>, vector<1x128x128xbf16>
    %54 = vector.shape_cast %53 : vector<1x128x128xbf16> to vector<128x128xbf16>
    %cst_37 = arith.constant dense<0.000000e+00> : vector<128x128xf32>
    %55 = tpu.matmul %52, %54, %cst_37 {dimension_numbers = #tpu.dot_dimension_numbers<[1], [0], [0], [1], [0, 0, 1, 1], [], []>} : vector<128x128xbf16>, vector<128x128xbf16>, vector<128x128xf32> -> vector<128x128xf32>
    %c4_38 = arith.constant 4 : index
    %c0_39 = arith.constant 0 : index
    %c0_40 = arith.constant 0 : index
    %56 = vector.load %arg5[%c4_38, %c0_39, %c0_40] : memref<6x1x128xf32, #tpu.memory_space<vmem>>, vector<1x1x128xf32>
    %57 = vector.shape_cast %56 : vector<1x1x128xf32> to vector<1x128xf32>
    %58 = vector.broadcast %57 : vector<1x128xf32> to vector<128x128xf32>
    %59 = arith.addf %55, %58 : vector<128x128xf32>
    %cst_41 = arith.constant 0.000000e+00 : f32
    %60 = vector.broadcast %cst_41 : f32 to vector<128x128xf32>
    %61 = arith.maximumf %59, %60 : vector<128x128xf32>
    %62 = vector.extract_strided_slice %41 {offsets = [0, 256], sizes = [128, 128], strides = [1, 1]} : vector<128x384xbf16> to vector<128x128xbf16>
    %c5 = arith.constant 5 : index
    %c0_42 = arith.constant 0 : index
    %c0_43 = arith.constant 0 : index
    %63 = vector.load %arg4[%c5, %c0_42, %c0_43] : memref<6x128x128xbf16, #tpu.memory_space<vmem>>, vector<1x128x128xbf16>
    %64 = vector.shape_cast %63 : vector<1x128x128xbf16> to vector<128x128xbf16>
    %cst_44 = arith.constant dense<0.000000e+00> : vector<128x128xf32>
    %65 = tpu.matmul %62, %64, %cst_44 {dimension_numbers = #tpu.dot_dimension_numbers<[1], [0], [0], [1], [0, 0, 1, 1], [], []>} : vector<128x128xbf16>, vector<128x128xbf16>, vector<128x128xf32> -> vector<128x128xf32>
    %c5_45 = arith.constant 5 : index
    %c0_46 = arith.constant 0 : index
    %c0_47 = arith.constant 0 : index
    %66 = vector.load %arg5[%c5_45, %c0_46, %c0_47] : memref<6x1x128xf32, #tpu.memory_space<vmem>>, vector<1x1x128xf32>
    %67 = vector.shape_cast %66 : vector<1x1x128xf32> to vector<1x128xf32>
    %68 = vector.broadcast %67 : vector<1x128xf32> to vector<128x128xf32>
    %69 = arith.addf %65, %68 : vector<128x128xf32>
    %cst_48 = arith.constant 0.000000e+00 : f32
    %70 = vector.broadcast %cst_48 : f32 to vector<128x128xf32>
    %71 = arith.maximumf %69, %70 : vector<128x128xf32>
    %72 = tpu.concatenate %51, %61, %71 in 1 : vector<128x128xf32>, vector<128x128xf32>, vector<128x128xf32> -> vector<128x384xf32>
    %73 = arith.truncf %72 : vector<128x384xf32> to vector<128x384xbf16>
    %c0_49 = arith.constant 0 : index
    %c0_50 = arith.constant 0 : index
    %74 = vector.load %arg7[%c0_49, %c0_50] : memref<1x128xf32, #tpu.memory_space<vmem>>, vector<1x128xf32>
    %75 = vector.extract_strided_slice %73 {offsets = [0, 0], sizes = [128, 128], strides = [1, 1]} : vector<128x384xbf16> to vector<128x128xbf16>
    %c0_51 = arith.constant 0 : index
    %c0_52 = arith.constant 0 : index
    %c0_53 = arith.constant 0 : index
    %76 = vector.load %arg6[%c0_51, %c0_52, %c0_53] : memref<3x128x128xbf16, #tpu.memory_space<vmem>>, vector<1x128x128xbf16>
    %77 = vector.shape_cast %76 : vector<1x128x128xbf16> to vector<128x128xbf16>
    %cst_54 = arith.constant dense<0.000000e+00> : vector<128x128xf32>
    %78 = tpu.matmul %75, %77, %cst_54 {dimension_numbers = #tpu.dot_dimension_numbers<[1], [0], [0], [1], [0, 0, 1, 1], [], []>} : vector<128x128xbf16>, vector<128x128xbf16>, vector<128x128xf32> -> vector<128x128xf32>
    %79 = vector.broadcast %74 : vector<1x128xf32> to vector<128x128xf32>
    %80 = arith.addf %79, %78 : vector<128x128xf32>
    %81 = vector.extract_strided_slice %73 {offsets = [0, 128], sizes = [128, 128], strides = [1, 1]} : vector<128x384xbf16> to vector<128x128xbf16>
    %c1_55 = arith.constant 1 : index
    %c0_56 = arith.constant 0 : index
    %c0_57 = arith.constant 0 : index
    %82 = vector.load %arg6[%c1_55, %c0_56, %c0_57] : memref<3x128x128xbf16, #tpu.memory_space<vmem>>, vector<1x128x128xbf16>
    %83 = vector.shape_cast %82 : vector<1x128x128xbf16> to vector<128x128xbf16>
    %cst_58 = arith.constant dense<0.000000e+00> : vector<128x128xf32>
    %84 = tpu.matmul %81, %83, %cst_58 {dimension_numbers = #tpu.dot_dimension_numbers<[1], [0], [0], [1], [0, 0, 1, 1], [], []>} : vector<128x128xbf16>, vector<128x128xbf16>, vector<128x128xf32> -> vector<128x128xf32>
    %85 = arith.addf %80, %84 : vector<128x128xf32>
    %86 = vector.extract_strided_slice %73 {offsets = [0, 256], sizes = [128, 128], strides = [1, 1]} : vector<128x384xbf16> to vector<128x128xbf16>
    %c2_59 = arith.constant 2 : index
    %c0_60 = arith.constant 0 : index
    %c0_61 = arith.constant 0 : index
    %87 = vector.load %arg6[%c2_59, %c0_60, %c0_61] : memref<3x128x128xbf16, #tpu.memory_space<vmem>>, vector<1x128x128xbf16>
    %88 = vector.shape_cast %87 : vector<1x128x128xbf16> to vector<128x128xbf16>
    %cst_62 = arith.constant dense<0.000000e+00> : vector<128x128xf32>
    %89 = tpu.matmul %86, %88, %cst_62 {dimension_numbers = #tpu.dot_dimension_numbers<[1], [0], [0], [1], [0, 0, 1, 1], [], []>} : vector<128x128xbf16>, vector<128x128xbf16>, vector<128x128xf32> -> vector<128x128xf32>
    %90 = arith.addf %85, %89 : vector<128x128xf32>
    %91 = arith.truncf %90 : vector<128x128xf32> to vector<128x128xbf16>
    %c0_63 = arith.constant 0 : index
    %c0_64 = arith.constant 0 : index
    %92 = vector.load %arg8[%c0_63, %c0_64] : memref<128x128xbf16, #tpu.memory_space<vmem>>, vector<128x128xbf16>
    tpu.vector_store %arg8[%c0_63, %c0_64], %91 {strides = array<i32>} : memref<128x128xbf16, #tpu.memory_space<vmem>>, vector<128x128xbf16>,
    return
  }
  func.func @transform_0(%arg0: i32) -> (i32, i32) {
    %c0_i32 = arith.constant 0 : i32
    %c0_i32_0 = arith.constant 0 : i32
    return %arg0, %c0_i32 : i32, i32
  }
  func.func @transform_1(%arg0: i32) -> (i32, i32) {
    %c0_i32 = arith.constant 0 : i32
    %c0_i32_0 = arith.constant 0 : i32
    %c0_i32_1 = arith.constant 0 : i32
    return %c0_i32, %c0_i32_0 : i32, i32
  }
  func.func @transform_2(%arg0: i32) -> (i32, i32) {
    %c0_i32 = arith.constant 0 : i32
    %c0_i32_0 = arith.constant 0 : i32
    %c0_i32_1 = arith.constant 0 : i32
    return %c0_i32, %c0_i32_0 : i32, i32
  }
  func.func @transform_3(%arg0: i32) -> (i32, i32, i32) {
    %c0_i32 = arith.constant 0 : i32
    %c0_i32_0 = arith.constant 0 : i32
    %c0_i32_1 = arith.constant 0 : i32
    %c0_i32_2 = arith.constant 0 : i32
    return %c0_i32, %c0_i32_0, %c0_i32_1 : i32, i32, i32
  }
  func.func @transform_4(%arg0: i32) -> (i32, i32, i32) {
    %c0_i32 = arith.constant 0 : i32
    %c0_i32_0 = arith.constant 0 : i32
    %c0_i32_1 = arith.constant 0 : i32
    %c0_i32_2 = arith.constant 0 : i32
    return %c0_i32, %c0_i32_0, %c0_i32_1 : i32, i32, i32
  }
  func.func @transform_5(%arg0: i32) -> (i32, i32, i32) {
    %c0_i32 = arith.constant 0 : i32
    %c0_i32_0 = arith.constant 0 : i32
    %c0_i32_1 = arith.constant 0 : i32
    %c0_i32_2 = arith.constant 0 : i32
    return %c0_i32, %c0_i32_0, %c0_i32_1 : i32, i32, i32
  }
  func.func @transform_6(%arg0: i32) -> (i32, i32) {
    %c0_i32 = arith.constant 0 : i32
    %c0_i32_0 = arith.constant 0 : i32
    %c0_i32_1 = arith.constant 0 : i32
    return %c0_i32, %c0_i32_0 : i32, i32
  }
  func.func @transform_7(%arg0: i32) -> (i32, i32) {
    %c0_i32 = arith.constant 0 : i32
    %c0_i32_0 = arith.constant 0 : i32
    return %arg0, %c0_i32 : i32, i32
  }
}

</mosaic_0001>

<bundles_post_ra>
// kernel: _lambda_.1
= control target key start
LH: loop header
LB: loop body
LE: loop exit
PB: predicated region body
PF: predicated region fallthrough
CT: control target
= control target key end

     0   :  { %12 = vsyncpa [#allocation3], 0  ;;  %s3890_s0 = inlined_call_operand.hbm [shape: f32[256,128], index: 0, kind: input, shape index: {}]   ;;  %s3891_s1 = inlined_call_operand.hbm [shape: bf16[128,384], index: 1, kind: input, shape index: {}]   ;;  %s3892_s2 = inlined_call_operand.hbm [shape: f32[1,384], index: 2, kind: input, shape index: {}]   ;;  %s3893_s3 = inlined_call_operand.hbm [shape: bf16[6,128,128], index: 3, kind: input, shape index: {}]   ;;  %s3894_s4 = inlined_call_operand.hbm [shape: f32[6,1,128], index: 4, kind: input, shape index: {}]   ;;  %s3895_s5 = inlined_call_operand.hbm [shape: bf16[3,128,128], index: 5, kind: input, shape index: {}]   ;;  %s3896_s6 = inlined_call_operand.vmem [shape: f32[1,128], index: 6, kind: input, shape index: {}]   ;;  %s3897_s7 = inlined_call_operand.vmem [shape: bf16[256,128], index: 7, kind: output, shape index: {}]  }
   0x1   :  { %14 = vsyncpa [#allocation3 + $0x1], 0 }
   0x2   :  { %15 = vsyncpa [#allocation5], 0 }
   0x3   :  { %16 = vsyncpa [#allocation8], 0 }
   0x4   :  { %17 = vsyncpa [#allocation11], 0  ;;  %s3536_s24 = smov 0   ;;  %s3538_s25 = smov 0  }
   0x5   :  { %s3540_s26 = smov 0   ;;  %s3542_s27 = smov 0  }
   0x6 LB: > { %s217_s30 = sshll.u32 %s3891_s1, 4  ;;  %s3898_s8 = sadd.s32 4294967295, %s3481_s27   ;;  %s3481_s27 = sphi %s3542_s27, %s3908_s27   ;;  %s3477_s26 = sphi %s3540_s26, %s3907_s26   ;;  %s3473_s25 = sphi %s3538_s25, %s3906_s25   ;;  %s3469_s24 = sphi %s3536_s24, %s3905_s24   ;;  %s218_s30 = int_to_ptr.hbm [resolvable:$true] %s217_s30 }
   0x7   : > { %p2601_p0 = scmp.ge.s32.totalorder %s3481_s27, 1  ;;  %p3563_p1 = scmp.eq.s32.totalorder %s3898_s8, 0 }
   0x8   : > { %p206_p2 = scmp.lt.s32.totalorder %s3481_s27, 3  ;;  %s3483_s11 = smov [#allocation4]  }
   0x9   : > { %s219_s12 = sshll.u32 %s3483_s11, 4  ;;  %s243_s15 = sshll.u32 %s3893_s3, 4  ;;  %s220_s12 = int_to_ptr.vmem [resolvable:$true] %s219_s12  ;;  %s244_s15 = int_to_ptr.hbm [resolvable:$true] %s243_s15 }
   0xa   : > { %p3568_p3 = pnand %p2601_p0, %p206_p2  ;;  %s3484_s17 = smov [#allocation7]  }
   0xb   : > { %s245_s18 = sshll.u32 %s3484_s17, 4  ;;  %s3485_s19 = smov 192   ;;  %s246_s18 = int_to_ptr.vmem [resolvable:$true] %s245_s18 }
   0xc   : > { %p3172_p4 = pneg %p3568_p3  ;;  %s3486_s20 = smov 12  }
   0xd   : > { %s3487_s21 = smov 64   ;;  %s3488_s22 = smov 4  }
   0xe   : > { %p3579_p5 = pnand %p3172_p4, %p3563_p1  ;;  %s232_s29 = sshll.u32 %s3892_s2, 4  ;;  %s233_s29 = int_to_ptr.hbm [resolvable:$true] %s232_s29 }
   0xf   : > { %s3489_s11 = smov [#allocation6]   ;;  %s271_s28 = sshll.u32 %s3895_s5, 4  ;;  %s272_s28 = int_to_ptr.hbm [resolvable:$true] %s271_s28 }
  0x10   : > { %3175 = dma.hbm_to_vmem [thread:$0]  (!%p3579_p5), %s218_s30, 3072, %s220_s12, [#allocation5], %s3485_s19, %s3485_s19, %s3486_s20  }
  0x11   : > { %3181 = dma.hbm_to_vmem [thread:$0]  (!%p3579_p5), %s244_s15, 6144, %s246_s18, [#allocation8], %s3487_s21, %s3487_s21, %s3488_s22  }
  0x12   : > { %s234_s13 = sshll.u32 %s3489_s11, 4  ;;  %s257_s30 = sshll.u32 %s3894_s4, 4  ;;  %s235_s13 = int_to_ptr.vmem [resolvable:$true] %s234_s13  ;;  %s258_s30 = int_to_ptr.hbm [resolvable:$true] %s257_s30 }
  0x13   : > { %3178 = dma.hbm_to_vmem [thread:$0]  (!%p3579_p5), %s233_s29, 48, %s235_s13, [#allocation5]  }
  0x14   : > { %s3490_s12 = smov [#allocation9]   ;;  %s3491_s18 = smov 16  }
  0x15   : > { %s259_s15 = sshll.u32 %s3490_s12, 4  ;;  %s3492_s19 = smov 1   ;;  %s260_s15 = int_to_ptr.vmem [resolvable:$true] %s259_s15 }
  0x16   : > { %3184 = dma.hbm_to_vmem [thread:$0]  (!%p3579_p5), %s258_s30, 96, %s260_s15, [#allocation8], %s3491_s18, %s3491_s18, %s3492_s19  }
  0x17   : > { %s3493_s29 = smov [#allocation10]   ;;  %s3603_s13 = sadd.s32 1, %s3481_s27  }
  0x18   : > { %s273_s11 = sshll.u32 %s3493_s29, 4  ;;  %s27_s14 = ssub.s32 %s3481_s27, %s3603_s13  ;;  %s274_s11 = int_to_ptr.vmem [resolvable:$true] %s273_s11 }
  0x19   : > { %3187 = dma.hbm_to_vmem [thread:$0]  (!%p3579_p5), %s272_s28, 3072, %s274_s11, [#allocation11], %s3487_s21, %s3487_s21, %s3488_s22  }
  0x1a   : > { %s30_s17 = sadd.s32 1, %s3477_s26  ;;  %p28_p6 = scmp.eq.s32.totalorder %s27_s14, 0 }
  0x1b   : > { %p37_p7 = scmp.ne.s32.totalorder %s3477_s26, %s3473_s25  ;;  %p38_p8 = scmp.eq.s32.totalorder %s3481_s27, 0 }
  0x1c   : > { %p43_p9 = scmp.ne.s32.totalorder %s3473_s25, %s3469_s24  ;;  %p3197_p12 = scmp.lt.s32.totalorder %s3481_s27, 2 }
  0x1d   : > { %s3614_s30 = scalar_select %p28_p6, %s3477_s26, %s30_s17  }
  0x1e   : > { %p39_p10 = por %p38_p8, %p37_p7  ;;  %p3618_p11 = por %p3563_p1, %p43_p9 }
  0x1f   : > { %s290_s16 = sand.u32 1, %s3477_s26   ;;  %s3006_s22 = sshll.u32 %s3481_s27, 7 }
  0x20   : > { %s2608_s21 = sshll.u32 %s290_s16, 7  ;;  %s299_s19 = scalar_lea.hbm %s3890_s0, %s3006_s22 }
  0x21   : > { %s294_s20 = scalar_lea.vmem [#allocation2], %s2608_s21  ;;  %s300_s28 = sshll.u32 %s299_s19, 4  ;;  %s301_s28 = int_to_ptr.hbm [resolvable:$true] %s300_s28 }
  0x22   : > { %s302_s23 = sshll.u32 %s294_s20, 4  ;;  %p3628_p13 = pnand %p3197_p12, %p39_p10  ;;  %s303_s23 = int_to_ptr.vmem [resolvable:$true] %s302_s23 }
  0x23   : > { %s291_s29 = scalar_lea.sflag [#allocation3], %s290_s16  ;;  %s3405_s11 = sshra.s32 %s301_s28, 4  ;;  %s3406_s11 = int_to_ptr.hbm [resolvable:$true] %s3405_s11 }
  0x24   : > { %s3407_s14 = scalar_lea.hbm %s3406_s11, 128  ;;  %p3409_p2 = pneg %p3628_p13 }
  0x25   : > { %p3408_p0 = scmp.ne.s32.totalorder %s3406_s11, %s3407_s14  ;;  %s3412_s22 = scalar_lea.hbm %s3890_s0, 256 }
  0x26   : > { %p3413_p6 = scmp.lt.s32.totalorder %s3406_s11, %s3890_s0  ;;  %p3414_p7 = scmp.lt.s32.totalorder %s3412_s22, %s3407_s14 }
  0x27   : > { %p3410_p4 = pnand %p3409_p2, %p3408_p0 }
  0x28   : > { %p3415_p8 = por %p3414_p7, %p3413_p6 }
  0x29   : > { %p3411_p5 = pneg %p3410_p4 }
  0x2b   : > { %p3416_p9 = pnand %p3415_p8, %p3411_p5 }
  0x2d   : > { %3419 = shalt.err (!%p3416_p9)
}
  0x2e   : > { %s3494_s16 = smov 128   ;;  %s3495_s19 = smov 8  }
  0x2f   : > { %3191 = dma.hbm_to_vmem [thread:$0]  (!%p3628_p13), %s301_s28, 2048, %s303_s23, %s291_s29, %s3494_s16, %s3494_s16, %s3495_s19  }
  0x30   : > { %314 = sbr.rel (%p3568_p3) target bundleno = 798 (0x31e), region = 48  ;;  %s316_s20 = sand.u32 (!%p3568_p3), 1, %s3473_s25  }
  0x31   : > { %s2612_s17 = sshll.u32 (!%p3568_p3), %s316_s20, 7  ;;  %s317_s21 = scalar_lea.sflag (!%p3568_p3), [#allocation3], %s316_s20 }
  0x32   : > { %s3645_s8 = scalar_lea.vmem (!%p3568_p3), [#allocation2], %s2612_s17 }
  0x35   : > { %3452 = dma.done.wait (%p3618_p11), %s317_s21, 2048  }
  0x36   : > { %3454 = vsyncadd (%p3618_p11), %s317_s21, 4294965248 }
  0x37   : > { %3456 = dma.done.wait (%p3563_p1), [#allocation5], 3120  }
  0x38   : > { %3458 = vsyncadd (%p3563_p1), [#allocation5], 4294964176 }
  0x39   : > { %3460 = dma.done.wait (%p3563_p1), [#allocation8], 6240  }
  0x3a   : > { %3462 = vsyncadd (%p3563_p1), [#allocation8], 4294961056 }
  0x3b   : > { %3464 = dma.done.wait (%p3563_p1), [#allocation11], 3072  }
  0x3c   : > { %3466 = vsyncadd (%p3563_p1), [#allocation11], 4294964224  ;;  %v2706_v0 = vld [vmem:[#allocation4 + $0xa8] sm:$0xf]  ;;  %v3029_v1 = vld [vmem:[#allocation4 + $0xb0] sm:$0xf0] }
  0x3d   : > { %v3028_v2 = vld [vmem:[#allocation4 + $0xac] sm:$0xf]  ;;  %v2707_v3 = vor.u32 %v3029_v1, %v2706_v0  ;;  %v2708_v4 = vld [vmem:[#allocation4 + $0xb4] sm:$0xf0]  ;;  %v2714_v5 = vld [vmem:[#allocation4 + $0xb0] sm:$0xf] }
  0x3e   : > { %v3030_v6 = vld [vmem:[#allocation4 + $0xb8] sm:$0xf0]  ;;  %v2711_v7 = vor.u32 %v3028_v2, %v2708_v4  ;;  %v2694_v9 = vld [vmem:[#allocation4 + $0x90] sm:$0xf]  ;;  %v3025_v11 = vld [vmem:[#allocation4 + $0x94] sm:$0xf] }
  0x3f   : > { %v2715_v8 = vor.u32 %v3030_v6, %v2714_v5  ;;  %v3026_v10 = vld [vmem:[#allocation4 + $0x98] sm:$0xf0]  ;;  %576 = vmatpush.bf16.msra.mxu0 %v2707_v3  ;;  %v2696_v13 = vld [vmem:[#allocation4 + $0x9c] sm:$0xf0]  ;;  %v2702_v14 = vld [vmem:[#allocation4 + $0x98] sm:$0xf] }
  0x40   : > { %v2695_v12 = vor.u32 %v3026_v10, %v2694_v9  ;;  %v3027_v15 = vld [vmem:[#allocation4 + $0xa0] sm:$0xf0]  ;;  %625 = vmatpush.bf16.msra.mxu1 %v2711_v7  ;;  %v2699_v16 = vor.u32 %v3025_v11, %v2696_v13  ;;  %v2682_v18 = vld [vmem:[#allocation4 + $0x78] sm:$0xf]  ;;  %v3022_v20 = vld [vmem:[#allocation4 + $0x7c] sm:$0xf] }
  0x41   : > { %674 = vmatpush.bf16.msra.mxu2 %v2715_v8  ;;  %v2703_v17 = vor.u32 %v3027_v15, %v2702_v14  ;;  %v3023_v19 = vld [vmem:[#allocation4 + $0x80] sm:$0xf0]  ;;  %v2684_v21 = vld [vmem:[#allocation4 + $0x84] sm:$0xf0]  ;;  %v2690_v22 = vld [vmem:[#allocation4 + $0x80] sm:$0xf] }
  0x42   : > { %v3024_v23 = vld [vmem:[#allocation4 + $0x88] sm:$0xf0]  ;;  %v2683_v24 = vor.u32 %v3023_v19, %v2682_v18  ;;  %v2687_v25 = vor.u32 %v3022_v20, %v2684_v21  ;;  %v2670_v27 = vld [vmem:[#allocation4 + $0x60] sm:$0xf]  ;;  %v3019_v29 = vld [vmem:[#allocation4 + $0x64] sm:$0xf] }
  0x43   : > { %577 = vmatpush.bf16.msra.mxu0 %v2695_v12  ;;  %v2691_v26 = vor.u32 %v3024_v23, %v2690_v22  ;;  %v3020_v28 = vld [vmem:[#allocation4 + $0x68] sm:$0xf0]  ;;  %v2672_v30 = vld [vmem:[#allocation4 + $0x6c] sm:$0xf0]  ;;  %v2678_v31 = vld [vmem:[#allocation4 + $0x68] sm:$0xf] }
  0x44   : > { %626 = vmatpush.bf16.msra.mxu1 %v2699_v16  ;;  %v3021_v32 = vld [vmem:[#allocation4 + $0x70] sm:$0xf0]  ;;  %v2671_v33 = vor.u32 %v3020_v28, %v2670_v27  ;;  %v2675_v34 = vor.u32 %v3019_v29, %v2672_v30  ;;  %v2658_v36 = vld [vmem:[#allocation4 + $0x48] sm:$0xf]  ;;  %v3016_v38 = vld [vmem:[#allocation4 + $0x4c] sm:$0xf] }
  0x45   : > { %675 = vmatpush.bf16.msra.mxu2 %v2703_v17  ;;  %v2679_v35 = vor.u32 %v3021_v32, %v2678_v31  ;;  %v3017_v37 = vld [vmem:[#allocation4 + $0x50] sm:$0xf0]  ;;  %v2660_v39 = vld [vmem:[#allocation4 + $0x54] sm:$0xf0]  ;;  %v2666_v40 = vld [vmem:[#allocation4 + $0x50] sm:$0xf] }
  0x46   : > { %v3018_v41 = vld [vmem:[#allocation4 + $0x58] sm:$0xf0]  ;;  %v2659_v42 = vor.u32 %v3017_v37, %v2658_v36  ;;  %v2646_v43 = vld [vmem:[#allocation4 + $0x30] sm:$0xf]  ;;  %v2663_v45 = vor.u32 %v3016_v38, %v2660_v39  ;;  %v3013_v47 = vld [vmem:[#allocation4 + $0x34] sm:$0xf] }
  0x47   : > { %578 = vmatpush.bf16.msra.mxu0 %v2683_v24  ;;  %v3014_v44 = vld [vmem:[#allocation4 + $0x38] sm:$0xf0]  ;;  %v2667_v46 = vor.u32 %v3018_v41, %v2666_v40  ;;  %v2648_v48 = vld [vmem:[#allocation4 + $0x3c] sm:$0xf0]  ;;  %v2654_v49 = vld [vmem:[#allocation4 + $0x38] sm:$0xf] }
  0x48   : > { %627 = vmatpush.bf16.msra.mxu1 %v2687_v25  ;;  %v3015_v50 = vld [vmem:[#allocation4 + $0x40] sm:$0xf0]  ;;  %v2647_v51 = vor.u32 %v3014_v44, %v2646_v43  ;;  %v2634_v52 = vld [vmem:[#allocation4 + $0x18] sm:$0xf]  ;;  %v2651_v54 = vor.u32 %v3013_v47, %v2648_v48  ;;  %v3010_v56 = vld [vmem:[#allocation4 + $0x1c] sm:$0xf] }
  0x49   : > { %676 = vmatpush.bf16.msra.mxu2 %v2691_v26  ;;  %v3011_v53 = vld [vmem:[#allocation4 + $0x20] sm:$0xf0]  ;;  %v2655_v55 = vor.u32 %v3015_v50, %v2654_v49  ;;  %v2636_v57 = vld [vmem:[#allocation4 + $0x24] sm:$0xf0]  ;;  %v2642_v58 = vld [vmem:[#allocation4 + $0x20] sm:$0xf] }
  0x4a   : > { %v3012_v59 = vld [vmem:[#allocation4 + $0x28] sm:$0xf0]  ;;  %v2635_v60 = vor.u32 %v3011_v53, %v2634_v52  ;;  %v2639_v61 = vor.u32 %v3010_v56, %v2636_v57  ;;  %v2622_v63 = vld [vmem:[#allocation4] sm:$0xf]  ;;  %v3007_v1 = vld [vmem:[#allocation4 + $0x4] sm:$0xf] }
  0x4b   : > { %579 = vmatpush.bf16.msra.mxu0 %v2671_v33  ;;  %v2643_v62 = vor.u32 %v3012_v59, %v2642_v58  ;;  %v3008_v0 = vld [vmem:[#allocation4 + $0x8] sm:$0xf0]  ;;  %v2624_v2 = vld [vmem:[#allocation4 + $0xc] sm:$0xf0]  ;;  %v2630_v3 = vld [vmem:[#allocation4 + $0x8] sm:$0xf] }
  0x4c   : > { %628 = vmatpush.bf16.msra.mxu1 %v2675_v34  ;;  %v3009_v4 = vld [vmem:[#allocation4 + $0x10] sm:$0xf0]  ;;  %v2623_v5 = vor.u32 %v3008_v0, %v2622_v63  ;;  %v384_v6 = vld [vmem:[%s3645_s8] sm:$0xff]  ;;  %v385_v7 = vld [vmem:[%s3645_s8 + $0x8] sm:$0xff]  ;;  %v2627_v8 = vor.u32 %v3007_v1, %v2624_v2 }
  0x4d   : > { %677 = vmatpush.bf16.msra.mxu2 %v2679_v35  ;;  %v2631_v9 = vor.u32 %v3009_v4, %v2630_v3  ;;  %v3046_v10 = vld [vmem:[#allocation7 + $0x78] sm:$0xff]  ;;  %v400_v12 = vpack.c.bf16 %v385_v7, %v384_v6  ;;  %v3045_v13 = vld [vmem:[#allocation7 + $0x70] sm:$0xff]  ;;  %v3044_v18 = vld [vmem:[#allocation7 + $0x68] sm:$0xff] }
  0x4e   : > { %v3054_v11 = vld [vmem:[#allocation7 + $0xb8] sm:$0xff]  ;;  %v3053_v14 = vld [vmem:[#allocation7 + $0xb0] sm:$0xff]  ;;  %v3052_v19 = vld [vmem:[#allocation7 + $0xa8] sm:$0xff] }
  0x4f   : > { %580 = vmatpush.bf16.msra.mxu0 %v2659_v42  ;;  %v386_v15 = vld [vmem:[%s3645_s8 + $0x10] sm:$0xff]  ;;  %v387_v16 = vld [vmem:[%s3645_s8 + $0x18] sm:$0xff]  ;;  %v388_v20 = vld [vmem:[%s3645_s8 + $0x20] sm:$0xff] }
  0x50   : > { %629 = vmatpush.bf16.msra.mxu1 %v2663_v45  ;;  %v401_v17 = vpack.c.bf16 %v387_v16, %v386_v15  ;;  %v389_v21 = vld [vmem:[%s3645_s8 + $0x28] sm:$0xff]  ;;  %v390_v25 = vld [vmem:[%s3645_s8 + $0x30] sm:$0xff]  ;;  %v391_v26 = vld [vmem:[%s3645_s8 + $0x38] sm:$0xff] }
  0x51   : > { %678 = vmatpush.bf16.msra.mxu2 %v2667_v46  ;;  %v402_v22 = vpack.c.bf16 %v389_v21, %v388_v20  ;;  %v3043_v23 = vld [vmem:[#allocation7 + $0x60] sm:$0xff]  ;;  %v403_v27 = vpack.c.bf16 %v391_v26, %v390_v25  ;;  %v3042_v28 = vld [vmem:[#allocation7 + $0x58] sm:$0xff]  ;;  %v3041_v33 = vld [vmem:[#allocation7 + $0x50] sm:$0xff] }
  0x52   : > { %v3051_v24 = vld [vmem:[#allocation7 + $0xa0] sm:$0xff]  ;;  %v3050_v29 = vld [vmem:[#allocation7 + $0x98] sm:$0xff]  ;;  %v3049_v34 = vld [vmem:[#allocation7 + $0x90] sm:$0xff] }
  0x53   : > { %581 = vmatpush.bf16.msra.mxu0 %v2647_v51  ;;  %v392_v30 = vld [vmem:[%s3645_s8 + $0x40] sm:$0xff]  ;;  %v393_v31 = vld [vmem:[%s3645_s8 + $0x48] sm:$0xff]  ;;  %v394_v35 = vld [vmem:[%s3645_s8 + $0x50] sm:$0xff] }
  0x54   : > { %630 = vmatpush.bf16.msra.mxu1 %v2651_v54  ;;  %v404_v32 = vpack.c.bf16 %v393_v31, %v392_v30  ;;  %v395_v36 = vld [vmem:[%s3645_s8 + $0x58] sm:$0xff]  ;;  %v3040_v39 = vld [vmem:[#allocation7 + $0x48] sm:$0xff]  ;;  %v396_v42 = vld [vmem:[%s3645_s8 + $0x60] sm:$0xff] }
  0x55   : > { %679 = vmatpush.bf16.msra.mxu2 %v2655_v55  ;;  %v405_v37 = vpack.c.bf16 %v395_v36, %v394_v35  ;;  %v3038_v38 = vld [vmem:[#allocation7 + $0x38] sm:$0xff]  ;;  %v3037_v40 = vld [vmem:[#allocation7 + $0x30] sm:$0xff]  ;;  %v3036_v41 = vld [vmem:[#allocation7 + $0x28] sm:$0xff] }
  0x56   : > { %919 = vmatpush.bf16.msra.mxu3 %v3038_v38  ;;  %v397_v43 = vld [vmem:[%s3645_s8 + $0x68] sm:$0xff]  ;;  %v3034_v46 = vld [vmem:[#allocation7 + $0x18] sm:$0xff]  ;;  %v3033_v47 = vld [vmem:[#allocation7 + $0x10] sm:$0xff] }
  0x57   : > { %582 = vmatpush.bf16.msra.mxu0 %v2635_v60  ;;  %v406_v44 = vpack.c.bf16 %v397_v43, %v396_v42  ;;  %v3035_v45 = vld [vmem:[#allocation7 + $0x20] sm:$0xff]  ;;  %v3048_v48 = vld [vmem:[#allocation7 + $0x88] sm:$0xff]  ;;  %v399_v51 = vld [vmem:[%s3645_s8 + $0x78] sm:$0xff] }
  0x58   : > { %631 = vmatpush.bf16.msra.mxu1 %v2639_v61  ;;  %v3032_v49 = vld [vmem:[#allocation7 + $0x8] sm:$0xff]  ;;  %v3039_v52 = vld [vmem:[#allocation7 + $0x40] sm:$0xff]  ;;  %v440_v56 = vld [vmem:[#allocation6] sm:$0x7] }
  0x59   : > { %680 = vmatpush.bf16.msra.mxu2 %v2643_v62  ;;  %v398_v50 = vld [vmem:[%s3645_s8 + $0x70] sm:$0xff]  ;;  %v3031_v54 = vld [vmem:[#allocation7] sm:$0xff]  ;;  %v3679_v57 = vperm.slane %v440_v56, 0  ;;  %v3681_v58 = vperm.slane %v440_v56, 1  ;;  %v3685_v63 = vperm.slane %v440_v56, 2  ;;  %s3904_s8 = sadd.s32 4294967295, %s3481_s27  }
  0x5a   : > { %920 = vmatpush.bf16.msra.mxu3 %v3037_v40  ;;  %v407_v53 = vpack.c.bf16 %v399_v51, %v398_v50  ;;  %v3047_v55 = vld [vmem:[#allocation7 + $0x80] sm:$0xff]  ;;  %s2618_s9 = sshll.u32 %s3904_s8, 4 }
  0x5b   : > { %583 = vmatpush.bf16.msra.mxu0 %v2623_v5  ;;  %p379_p1 = scmp.lt.s32.totalorder %s2618_s9, 31 }
  0x5c   : > { %632 = vmatpush.bf16.msra.mxu1 %v2627_v8 }
  0x5d   : > { %681 = vmatpush.bf16.msra.mxu2 %v2631_v9  ;;  %s3910_s9 = smov (!%p379_p1, %s2618_s9), 31 }
  0x5e   : > { %584 = vmatmul.bf16.vlgmr.msra.gmra.mxu0 %v400_v12  ;;  %921 = vmatpush.bf16.msra.mxu3 %v3036_v41  ;;  %s2619_s23 = sshll.u32 %s3910_s9, 2 }
  0x5f   : > { %1086 = vmatpush.bf16.msrb.mxu0 %v3046_v10  ;;  %633 = vmatmul.bf16.vlgmr.msra.gmra.mxu1 %v400_v12  ;;  %s3853_s24 = scalar_lea.vmem %s3897_s7, %s2619_s23 }
  0x60   : > { %1269 = vmatpush.bf16.msrb.mxu1 %v3054_v11  ;;  %682 = vmatmul.bf16.vlgmr.msra.gmra.mxu2 %v400_v12 }
  0x62   : > { %922 = vmatpush.bf16.msra.mxu3 %v3035_v45 }
  0x63   : > { %1087 = vmatpush.bf16.msrb.mxu0 %v3045_v13  ;;  %v3062_v13 = vld [vmem:[#allocation7 + $0xf8] sm:$0xff] }
  0x64   : > { %1270 = vmatpush.bf16.msrb.mxu1 %v3053_v14  ;;  %v3070_v14 = vld [vmem:[#allocation7 + $0x138] sm:$0xff]  ;;  %1484 = vmatpush.bf16.msrb.mxu2 %v3062_v13 }
  0x66   : > { %923 = vmatpush.bf16.msra.mxu3 %v3034_v46 }
  0x67   : > { %1088 = vmatpush.bf16.msrb.mxu0 %v3044_v18 }
  0x68   : > { %1271 = vmatpush.bf16.msrb.mxu1 %v3052_v19 }
  0x6a   : > { %924 = vmatpush.bf16.msra.mxu3 %v3033_v47  ;;  %v3061_v47 = vld [vmem:[#allocation7 + $0xf0] sm:$0xff] }
  0x6b   : > { %1089 = vmatpush.bf16.msrb.mxu0 %v3043_v23  ;;  %1485 = vmatpush.bf16.msrb.mxu2 %v3061_v47 }
  0x6c   : > { %1272 = vmatpush.bf16.msrb.mxu1 %v3051_v24 }
  0x6e   : > { %589 = vmatmul.bf16.gmra.mxu0 %v401_v17  ;;  %925 = vmatpush.bf16.msra.mxu3 %v3032_v49 }
  0x6f   : > { %638 = vmatmul.bf16.gmra.mxu1 %v401_v17  ;;  %1090 = vmatpush.bf16.msrb.mxu0 %v3042_v28 }
  0x70   : > { %687 = vmatmul.bf16.gmra.mxu2 %v401_v17  ;;  %1273 = vmatpush.bf16.msrb.mxu1 %v3050_v29 }
  0x72   : > { %926 = vmatpush.bf16.msra.mxu3 %v3031_v54 }
  0x73   : > { %1091 = vmatpush.bf16.msrb.mxu0 %v3041_v33 }
  0x74   : > { %1274 = vmatpush.bf16.msrb.mxu1 %v3049_v34 }
  0x76   : > { %1651 = vmatpush.bf16.msrb.mxu3 %v3070_v14 }
  0x77   : > { %1092 = vmatpush.bf16.msrb.mxu0 %v3040_v39 }
  0x78   : > { %1275 = vmatpush.bf16.msrb.mxu1 %v3048_v48  ;;  %v3069_v48 = vld [vmem:[#allocation7 + $0x130] sm:$0xff] }
  0x7a   : > { %1652 = vmatpush.bf16.msrb.mxu3 %v3069_v48 }
  0x7b   : > { %1093 = vmatpush.bf16.msrb.mxu0 %v3039_v52 }
  0x7c   : > { %1276 = vmatpush.bf16.msrb.mxu1 %v3047_v55 }
  0x7e   : > { %594 = vmatmul.bf16.gmra.mxu0 %v402_v22 }
  0x7f   : > { %643 = vmatmul.bf16.gmra.mxu1 %v402_v22 }
  0x80   : > { %692 = vmatmul.bf16.gmra.mxu2 %v402_v22 }
  0x8e   : > { %599 = vmatmul.bf16.gmra.mxu0 %v403_v27 }
  0x8f   : > { %648 = vmatmul.bf16.gmra.mxu1 %v403_v27 }
  0x90   : > { %697 = vmatmul.bf16.gmra.mxu2 %v403_v27 }
  0x9e   : > { %604 = vmatmul.bf16.gmra.mxu0 %v404_v32 }
  0x9f   : > { %653 = vmatmul.bf16.gmra.mxu1 %v404_v32 }
  0xa0   : > { %702 = vmatmul.bf16.gmra.mxu2 %v404_v32  ;;  %v3078_v32 = vld [vmem:[#allocation7 + $0x178] sm:$0xff] }
  0xa1   : > { %1834 = vmatpush.bf16.msra.mxu0 %v3078_v32 }
  0xae   : > { %609 = vmatmul.bf16.gmra.mxu0 %v405_v37 }
  0xaf   : > { %658 = vmatmul.bf16.gmra.mxu1 %v405_v37 }
  0xb0   : > { %707 = vmatmul.bf16.gmra.mxu2 %v405_v37 }
  0xbe   : > { %614 = vmatmul.bf16.gmra.mxu0 %v406_v44 }
  0xbf   : > { %663 = vmatmul.bf16.gmra.mxu1 %v406_v44 }
  0xc0   : > { %712 = vmatmul.bf16.gmra.mxu2 %v406_v44 }
  0xce   : > { %619 = vmatmul.bf16.gmra.mxu0 %v407_v53 }
  0xcf   : > { %668 = vmatmul.bf16.gmra.mxu1 %v407_v53 }
  0xd0   : > { %717 = vmatmul.bf16.gmra.mxu2 %v407_v53 }
  0xdb   : > { %v585_v59 = vpop.f32.mrf.mxu0 }
  0xdc   : > { %v634_v60 = vpop.f32.mrf.mxu1  ;;  %v586_v61 = vadd.f32 %v585_v59, %v3679_v57 }
  0xdd   : > { %v635_v62 = vadd.f32 %v634_v60, %v3681_v58 }
  0xde   : > { %v723_v0 = vmax.f32 %v586_v61, 0.0 }
  0xdf   : > { %v724_v1 = vmax.f32 %v635_v62, 0.0 }
  0xe1   : > { %v771_v8 = vpack.c.bf16 %v724_v1, %v723_v0 }
  0xe3   : > { %v683_v2 = vpop.f32.mrf.mxu2  ;;  %v587_v4 = vpop.f32.mrf.mxu0  ;;  %v1006_v15 = vunpack.c.h.b16 %v771_v8  ;;  %v839_v17 = vunpack.c.l.b16 %v771_v8 }
  0xe4   : > { %v684_v3 = vadd.f32 %v683_v2, %v3685_v63  ;;  %v588_v5 = vadd.f32 %v587_v4, %v3679_v57  ;;  %v636_v6 = vpop.f32.mrf.mxu1 }
  0xe5   : > { %v637_v7 = vadd.f32 %v636_v6, %v3681_v58 }
  0xe6   : > { %v726_v9 = vmax.f32 %v588_v5, 0.0  ;;  %v725_v10 = vmax.f32 %v684_v3, 0.0 }
  0xe7   : > { %v727_v11 = vmax.f32 %v637_v7, 0.0 }
  0xe8   : > { %v772_v18 = vpack.c.bf16 %v725_v10, %v725_v10 }
  0xe9   : > { %v773_v12 = vpack.c.bf16 %v727_v11, %v726_v9  ;;  %v3077_v11 = vld [vmem:[#allocation7 + $0x170] sm:$0xff] }
  0xea   : > { %v1189_v29 = vunpack.c.l.b16 %v772_v18  ;;  %1835 = vmatpush.bf16.msra.mxu0 %v3077_v11 }
  0xeb   : > { %v685_v16 = vpop.f32.mrf.mxu2  ;;  %v590_v20 = vpop.f32.mrf.mxu0  ;;  %v840_v21 = vunpack.c.l.b16 %v773_v12  ;;  %v1007_v22 = vunpack.c.h.b16 %v773_v12 }
  0xec   : > { %v686_v19 = vadd.f32 %v685_v16, %v3685_v63  ;;  %v639_v23 = vpop.f32.mrf.mxu1  ;;  %v591_v27 = vadd.f32 %v590_v20, %v3679_v57  ;;  %v3060_v20 = vld [vmem:[#allocation7 + $0xe8] sm:$0xff] }
  0xed   : > { %v855_v25 = vpack.c.b16 %v840_v21, %v839_v17  ;;  %v1022_v26 = vpack.c.b16 %v1007_v22, %v1006_v15  ;;  %v640_v28 = vadd.f32 %v639_v23, %v3681_v58  ;;  %v3068_v21 = vld [vmem:[#allocation7 + $0x128] sm:$0xff]  ;;  %1486 = vmatpush.bf16.msrb.mxu2 %v3060_v20 }
  0xee   : > { %v728_v24 = vmax.f32 %v686_v19, 0.0  ;;  %v729_v33 = vmax.f32 %v591_v27, 0.0  ;;  %1653 = vmatpush.bf16.msrb.mxu3 %v3068_v21 }
  0xef   : > { %927 = vmatmul.bf16.vlgmr.msra.gmra.mxu3 %v855_v25  ;;  %1094 = vmatmul.bf16.vlgmr.msrb.gmra.mxu0 %v1022_v26  ;;  %v730_v34 = vmax.f32 %v640_v28, 0.0 }
  0xf0   : > { %v774_v30 = vpack.c.bf16 %v728_v24, %v728_v24 }
  0xf1   : > { %v775_v42 = vpack.c.bf16 %v730_v34, %v729_v33 }
  0xf2   : > { %v1190_v31 = vunpack.c.l.b16 %v774_v30 }
  0xf3   : > { %v688_v35 = vpop.f32.mrf.mxu2  ;;  %v592_v37 = vpop.f32.mrf.mxu0  ;;  %v841_v50 = vunpack.c.l.b16 %v775_v42  ;;  %v1008_v51 = vunpack.c.h.b16 %v775_v42 }
  0xf4   : > { %v689_v36 = vadd.f32 %v688_v35, %v3685_v63  ;;  %v1205_v38 = vpack.c.b16 %v1190_v31, %v1189_v29  ;;  %v593_v39 = vadd.f32 %v592_v37, %v3679_v57  ;;  %v641_v40 = vpop.f32.mrf.mxu1 }
  0xf5   : > { %v642_v41 = vadd.f32 %v641_v40, %v3681_v58 }
  0xf6   : > { %1277 = vmatmul.bf16.vlgmr.msrb.gmra.mxu1 %v1205_v38  ;;  %v732_v43 = vmax.f32 %v593_v39, 0.0  ;;  %v731_v44 = vmax.f32 %v689_v36, 0.0 }
  0xf7   : > { %v733_v45 = vmax.f32 %v642_v41, 0.0 }
  0xf8   : > { %v776_v52 = vpack.c.bf16 %v731_v44, %v731_v44 }
  0xf9   : > { %v777_v46 = vpack.c.bf16 %v733_v45, %v732_v43  ;;  %v3076_v45 = vld [vmem:[#allocation7 + $0x168] sm:$0xff] }
  0xfa   : > { %v1191_v2 = vunpack.c.l.b16 %v776_v52  ;;  %1836 = vmatpush.bf16.msra.mxu0 %v3076_v45 }
  0xfb   : > { %v690_v49 = vpop.f32.mrf.mxu2  ;;  %v595_v54 = vpop.f32.mrf.mxu0  ;;  %v842_v55 = vunpack.c.l.b16 %v777_v46  ;;  %v1009_v56 = vunpack.c.h.b16 %v777_v46 }
  0xfc   : > { %v691_v53 = vadd.f32 %v690_v49, %v3685_v63  ;;  %v644_v59 = vpop.f32.mrf.mxu1  ;;  %v596_v0 = vadd.f32 %v595_v54, %v3679_v57  ;;  %v3059_v54 = vld [vmem:[#allocation7 + $0xe0] sm:$0xff] }
  0xfd   : > { %v856_v61 = vpack.c.b16 %v842_v55, %v841_v50  ;;  %v1023_v62 = vpack.c.b16 %v1009_v56, %v1008_v51  ;;  %v645_v1 = vadd.f32 %v644_v59, %v3681_v58  ;;  %v3067_v55 = vld [vmem:[#allocation7 + $0x120] sm:$0xff]  ;;  %1487 = vmatpush.bf16.msrb.mxu2 %v3059_v54 }
  0xfe   : > { %v734_v60 = vmax.f32 %v691_v53, 0.0  ;;  %v735_v5 = vmax.f32 %v596_v0, 0.0  ;;  %1654 = vmatpush.bf16.msrb.mxu3 %v3067_v55 }
  0xff   : > { %932 = vmatmul.bf16.gmra.mxu3 %v856_v61  ;;  %1099 = vmatmul.bf16.gmra.mxu0 %v1023_v62  ;;  %v736_v6 = vmax.f32 %v645_v1, 0.0 }
 0x100   : > { %v778_v3 = vpack.c.bf16 %v734_v60, %v734_v60 }
 0x101   : > { %v779_v15 = vpack.c.bf16 %v736_v6, %v735_v5 }
 0x102   : > { %v1192_v4 = vunpack.c.l.b16 %v778_v3 }
 0x103   : > { %v693_v7 = vpop.f32.mrf.mxu2  ;;  %v597_v9 = vpop.f32.mrf.mxu0  ;;  %v843_v23 = vunpack.c.l.b16 %v779_v15  ;;  %v1010_v24 = vunpack.c.h.b16 %v779_v15 }
 0x104   : > { %v694_v8 = vadd.f32 %v693_v7, %v3685_v63  ;;  %v1206_v10 = vpack.c.b16 %v1192_v4, %v1191_v2  ;;  %v598_v12 = vadd.f32 %v597_v9, %v3679_v57  ;;  %v646_v13 = vpop.f32.mrf.mxu1 }
 0x105   : > { %v647_v14 = vadd.f32 %v646_v13, %v3681_v58 }
 0x106   : > { %1282 = vmatmul.bf16.gmra.mxu1 %v1206_v10  ;;  %v738_v16 = vmax.f32 %v598_v12, 0.0  ;;  %v737_v17 = vmax.f32 %v694_v8, 0.0 }
 0x107   : > { %v739_v18 = vmax.f32 %v647_v14, 0.0 }
 0x108   : > { %v780_v25 = vpack.c.bf16 %v737_v17, %v737_v17 }
 0x109   : > { %v781_v19 = vpack.c.bf16 %v739_v18, %v738_v16  ;;  %v3075_v18 = vld [vmem:[#allocation7 + $0x160] sm:$0xff] }
 0x10a   : > { %v1193_v36 = vunpack.c.l.b16 %v780_v25  ;;  %1837 = vmatpush.bf16.msra.mxu0 %v3075_v18 }
 0x10b   : > { %v695_v22 = vpop.f32.mrf.mxu2  ;;  %v600_v27 = vpop.f32.mrf.mxu0  ;;  %v844_v28 = vunpack.c.l.b16 %v781_v19  ;;  %v1011_v29 = vunpack.c.h.b16 %v781_v19 }
 0x10c   : > { %v696_v26 = vadd.f32 %v695_v22, %v3685_v63  ;;  %v649_v30 = vpop.f32.mrf.mxu1  ;;  %v601_v34 = vadd.f32 %v600_v27, %v3679_v57  ;;  %v3058_v27 = vld [vmem:[#allocation7 + $0xd8] sm:$0xff] }
 0x10d   : > { %v857_v32 = vpack.c.b16 %v844_v28, %v843_v23  ;;  %v1024_v33 = vpack.c.b16 %v1011_v29, %v1010_v24  ;;  %v650_v35 = vadd.f32 %v649_v30, %v3681_v58  ;;  %v3066_v28 = vld [vmem:[#allocation7 + $0x118] sm:$0xff]  ;;  %1488 = vmatpush.bf16.msrb.mxu2 %v3058_v27 }
 0x10e   : > { %v740_v31 = vmax.f32 %v696_v26, 0.0  ;;  %v741_v39 = vmax.f32 %v601_v34, 0.0  ;;  %1655 = vmatpush.bf16.msrb.mxu3 %v3066_v28 }
 0x10f   : > { %937 = vmatmul.bf16.gmra.mxu3 %v857_v32  ;;  %1104 = vmatmul.bf16.gmra.mxu0 %v1024_v33  ;;  %v742_v40 = vmax.f32 %v650_v35, 0.0 }
 0x110   : > { %v782_v37 = vpack.c.bf16 %v740_v31, %v740_v31 }
 0x111   : > { %v783_v49 = vpack.c.bf16 %v742_v40, %v741_v39 }
 0x112   : > { %v1194_v38 = vunpack.c.l.b16 %v782_v37 }
 0x113   : > { %v698_v41 = vpop.f32.mrf.mxu2  ;;  %v602_v43 = vpop.f32.mrf.mxu0  ;;  %v845_v59 = vunpack.c.l.b16 %v783_v49  ;;  %v1012_v60 = vunpack.c.h.b16 %v783_v49 }
 0x114   : > { %v699_v42 = vadd.f32 %v698_v41, %v3685_v63  ;;  %v1207_v44 = vpack.c.b16 %v1194_v38, %v1193_v36  ;;  %v603_v46 = vadd.f32 %v602_v43, %v3679_v57  ;;  %v651_v47 = vpop.f32.mrf.mxu1 }
 0x115   : > { %v652_v48 = vadd.f32 %v651_v47, %v3681_v58 }
 0x116   : > { %1287 = vmatmul.bf16.gmra.mxu1 %v1207_v44  ;;  %v744_v50 = vmax.f32 %v603_v46, 0.0  ;;  %v743_v51 = vmax.f32 %v699_v42, 0.0 }
 0x117   : > { %v745_v52 = vmax.f32 %v652_v48, 0.0 }
 0x118   : > { %v784_v61 = vpack.c.bf16 %v743_v51, %v743_v51 }
 0x119   : > { %v785_v53 = vpack.c.bf16 %v745_v52, %v744_v50  ;;  %v3074_v52 = vld [vmem:[#allocation7 + $0x158] sm:$0xff] }
 0x11a   : > { %v1195_v9 = vunpack.c.l.b16 %v784_v61  ;;  %1838 = vmatpush.bf16.msra.mxu0 %v3074_v52  ;;  %v3072_v52 = vld [vmem:[#allocation7 + $0x148] sm:$0xff] }
 0x11b   : > { %v700_v56 = vpop.f32.mrf.mxu2  ;;  %v605_v0 = vpop.f32.mrf.mxu0  ;;  %v846_v1 = vunpack.c.l.b16 %v785_v53  ;;  %v1013_v2 = vunpack.c.h.b16 %v785_v53 }
 0x11c   : > { %v701_v62 = vadd.f32 %v700_v56, %v3685_v63  ;;  %v654_v3 = vpop.f32.mrf.mxu1  ;;  %v606_v7 = vadd.f32 %v605_v0, %v3679_v57  ;;  %v3057_v0 = vld [vmem:[#allocation7 + $0xd0] sm:$0xff] }
 0x11d   : > { %v858_v5 = vpack.c.b16 %v846_v1, %v845_v59  ;;  %v1025_v6 = vpack.c.b16 %v1013_v2, %v1012_v60  ;;  %v655_v8 = vadd.f32 %v654_v3, %v3681_v58  ;;  %v3065_v1 = vld [vmem:[#allocation7 + $0x110] sm:$0xff]  ;;  %1489 = vmatpush.bf16.msrb.mxu2 %v3057_v0 }
 0x11e   : > { %v746_v4 = vmax.f32 %v701_v62, 0.0  ;;  %v747_v12 = vmax.f32 %v606_v7, 0.0  ;;  %1656 = vmatpush.bf16.msrb.mxu3 %v3065_v1 }
 0x11f   : > { %942 = vmatmul.bf16.gmra.mxu3 %v858_v5  ;;  %1109 = vmatmul.bf16.gmra.mxu0 %v1025_v6  ;;  %v748_v13 = vmax.f32 %v655_v8, 0.0 }
 0x120   : > { %v786_v10 = vpack.c.bf16 %v746_v4, %v746_v4 }
 0x121   : > { %v787_v22 = vpack.c.bf16 %v748_v13, %v747_v12 }
 0x122   : > { %v1196_v11 = vunpack.c.l.b16 %v786_v10 }
 0x123   : > { %v703_v14 = vpop.f32.mrf.mxu2  ;;  %v607_v16 = vpop.f32.mrf.mxu0  ;;  %v1014_v29 = vunpack.c.h.b16 %v787_v22  ;;  %v847_v31 = vunpack.c.l.b16 %v787_v22 }
 0x124   : > { %v704_v15 = vadd.f32 %v703_v14, %v3685_v63  ;;  %v1208_v17 = vpack.c.b16 %v1196_v11, %v1195_v9  ;;  %v608_v19 = vadd.f32 %v607_v16, %v3679_v57  ;;  %v656_v20 = vpop.f32.mrf.mxu1 }
 0x125   : > { %v657_v21 = vadd.f32 %v656_v20, %v3681_v58 }
 0x126   : > { %1292 = vmatmul.bf16.gmra.mxu1 %v1208_v17  ;;  %v750_v23 = vmax.f32 %v608_v19, 0.0  ;;  %v749_v24 = vmax.f32 %v704_v15, 0.0  ;;  %v3073_v19 = vld [vmem:[#allocation7 + $0x150] sm:$0xff] }
 0x127   : > { %v751_v25 = vmax.f32 %v657_v21, 0.0  ;;  %1839 = vmatpush.bf16.msra.mxu0 %v3073_v19  ;;  %v3071_v19 = vld [vmem:[#allocation7 + $0x140] sm:$0xff] }
 0x128   : > { %v788_v32 = vpack.c.bf16 %v749_v24, %v749_v24 }
 0x129   : > { %v789_v26 = vpack.c.bf16 %v751_v25, %v750_v23 }
 0x12a   : > { %v1197_v43 = vunpack.c.l.b16 %v788_v32 }
 0x12b   : > { %v705_v30 = vpop.f32.mrf.mxu2  ;;  %v610_v34 = vpop.f32.mrf.mxu0  ;;  %v848_v35 = vunpack.c.l.b16 %v789_v26  ;;  %v1015_v36 = vunpack.c.h.b16 %v789_v26  ;;  %1840 = vmatpush.bf16.msra.mxu0 %v3072_v52  ;;  %v3094_v52 = vld [vmem:[#allocation10 + $0x78] sm:$0xff] }
 0x12c   : > { %v706_v33 = vadd.f32 %v705_v30, %v3685_v63  ;;  %v659_v37 = vpop.f32.mrf.mxu1  ;;  %v611_v41 = vadd.f32 %v610_v34, %v3679_v57  ;;  %v3064_v30 = vld [vmem:[#allocation7 + $0x108] sm:$0xff] }
 0x12d   : > { %v859_v39 = vpack.c.b16 %v848_v35, %v847_v31  ;;  %v1026_v40 = vpack.c.b16 %v1015_v36, %v1014_v29  ;;  %v660_v42 = vadd.f32 %v659_v37, %v3681_v58  ;;  %v3056_v29 = vld [vmem:[#allocation7 + $0xc8] sm:$0xff]  ;;  %1657 = vmatpush.bf16.msrb.mxu3 %v3064_v30 }
 0x12e   : > { %v752_v38 = vmax.f32 %v706_v33, 0.0  ;;  %v753_v46 = vmax.f32 %v611_v41, 0.0  ;;  %1490 = vmatpush.bf16.msrb.mxu2 %v3056_v29 }
 0x12f   : > { %947 = vmatmul.bf16.gmra.mxu3 %v859_v39  ;;  %1114 = vmatmul.bf16.gmra.mxu0 %v1026_v40  ;;  %v754_v47 = vmax.f32 %v660_v42, 0.0 }
 0x130   : > { %v790_v44 = vpack.c.bf16 %v752_v38, %v752_v38  ;;  %1841 = vmatpush.bf16.msra.mxu0 %v3071_v19 }
 0x131   : > { %v791_v56 = vpack.c.bf16 %v754_v47, %v753_v46 }
 0x132   : > { %v1198_v45 = vunpack.c.l.b16 %v790_v44 }
 0x133   : > { %v708_v48 = vpop.f32.mrf.mxu2  ;;  %v612_v50 = vpop.f32.mrf.mxu0  ;;  %v1016_v2 = vunpack.c.h.b16 %v791_v56  ;;  %v849_v4 = vunpack.c.l.b16 %v791_v56 }
 0x134   : > { %v709_v49 = vadd.f32 %v708_v48, %v3685_v63  ;;  %v1209_v51 = vpack.c.b16 %v1198_v45, %v1197_v43  ;;  %v613_v53 = vadd.f32 %v612_v50, %v3679_v57  ;;  %v661_v54 = vpop.f32.mrf.mxu1 }
 0x135   : > { %v662_v55 = vadd.f32 %v661_v54, %v3681_v58 }
 0x136   : > { %1297 = vmatmul.bf16.gmra.mxu1 %v1209_v51  ;;  %v756_v59 = vmax.f32 %v613_v53, 0.0  ;;  %v755_v60 = vmax.f32 %v709_v49, 0.0 }
 0x137   : > { %v757_v61 = vmax.f32 %v662_v55, 0.0 }
 0x138   : > { %v792_v5 = vpack.c.bf16 %v755_v60, %v755_v60 }
 0x139   : > { %v793_v62 = vpack.c.bf16 %v757_v61, %v756_v59 }
 0x13a   : > { %v1199_v16 = vunpack.c.l.b16 %v792_v5 }
 0x13b   : > { %v710_v3 = vpop.f32.mrf.mxu2  ;;  %v615_v7 = vpop.f32.mrf.mxu0  ;;  %v850_v8 = vunpack.c.l.b16 %v793_v62  ;;  %v1017_v9 = vunpack.c.h.b16 %v793_v62 }
 0x13c   : > { %v711_v6 = vadd.f32 %v710_v3, %v3685_v63  ;;  %v664_v10 = vpop.f32.mrf.mxu1  ;;  %v616_v14 = vadd.f32 %v615_v7, %v3679_v57  ;;  %v3055_v7 = vld [vmem:[#allocation7 + $0xc0] sm:$0xff] }
 0x13d   : > { %v860_v12 = vpack.c.b16 %v850_v8, %v849_v4  ;;  %v1027_v13 = vpack.c.b16 %v1017_v9, %v1016_v2  ;;  %v665_v15 = vadd.f32 %v664_v10, %v3681_v58  ;;  %v3063_v8 = vld [vmem:[#allocation7 + $0x100] sm:$0xff]  ;;  %1491 = vmatpush.bf16.msrb.mxu2 %v3055_v7 }
 0x13e   : > { %v758_v11 = vmax.f32 %v711_v6, 0.0  ;;  %v759_v20 = vmax.f32 %v616_v14, 0.0  ;;  %1658 = vmatpush.bf16.msrb.mxu3 %v3063_v8 }
 0x13f   : > { %952 = vmatmul.bf16.gmra.mxu3 %v860_v12  ;;  %1119 = vmatmul.bf16.gmra.mxu0 %v1027_v13  ;;  %v760_v21 = vmax.f32 %v665_v15, 0.0 }
 0x140   : > { %v794_v17 = vpack.c.bf16 %v758_v11, %v758_v11 }
 0x141   : > { %v795_v31 = vpack.c.bf16 %v760_v21, %v759_v20  ;;  %2209 = vmatpush.bf16.msra.mxu2 %v3094_v52 }
 0x142   : > { %v1200_v18 = vunpack.c.l.b16 %v794_v17 }
 0x143   : > { %v713_v22 = vpop.f32.mrf.mxu2  ;;  %v617_v24 = vpop.f32.mrf.mxu0  ;;  %v1018_v36 = vunpack.c.h.b16 %v795_v31  ;;  %v851_v38 = vunpack.c.l.b16 %v795_v31 }
 0x144   : > { %v714_v23 = vadd.f32 %v713_v22, %v3685_v63  ;;  %v1210_v25 = vpack.c.b16 %v1200_v18, %v1199_v16  ;;  %v618_v26 = vadd.f32 %v617_v24, %v3679_v57  ;;  %v666_v27 = vpop.f32.mrf.mxu1  ;;  %v3737_v24 = vld [vmem:[#allocation9 + $0x1] ss:$0 sm:$0xff] }
 0x145   : > { %v667_v28 = vadd.f32 %v666_v27, %v3681_v58 }
 0x146   : > { %1302 = vmatmul.bf16.gmra.mxu1 %v1210_v25  ;;  %v762_v32 = vmax.f32 %v618_v26, 0.0  ;;  %v761_v33 = vmax.f32 %v714_v23, 0.0  ;;  %v3733_v23 = vld [vmem:[#allocation9] ss:$0 sm:$0xff] }
 0x147   : > { %v763_v34 = vmax.f32 %v667_v28, 0.0 }
 0x148   : > { %v796_v39 = vpack.c.bf16 %v761_v33, %v761_v33 }
 0x149   : > { %v797_v35 = vpack.c.bf16 %v763_v34, %v762_v32 }
 0x14a   : > { %v1201_v50 = vunpack.c.l.b16 %v796_v39 }
 0x14b   : > { %v715_v37 = vpop.f32.mrf.mxu2  ;;  %v620_v41 = vpop.f32.mrf.mxu0  ;;  %v852_v42 = vunpack.c.l.b16 %v797_v35  ;;  %v1019_v43 = vunpack.c.h.b16 %v797_v35 }
 0x14c   : > { %v716_v40 = vadd.f32 %v715_v37, %v3685_v63  ;;  %v669_v44 = vpop.f32.mrf.mxu1  ;;  %v621_v48 = vadd.f32 %v620_v41, %v3679_v57 }
 0x14d   : > { %v861_v46 = vpack.c.b16 %v852_v42, %v851_v38  ;;  %v1028_v47 = vpack.c.b16 %v1019_v43, %v1018_v36  ;;  %v670_v49 = vadd.f32 %v669_v44, %v3681_v58 }
 0x14e   : > { %v764_v45 = vmax.f32 %v716_v40, 0.0  ;;  %v765_v54 = vmax.f32 %v621_v48, 0.0 }
 0x14f   : > { %957 = vmatmul.bf16.gmra.mxu3 %v861_v46  ;;  %1124 = vmatmul.bf16.gmra.mxu0 %v1028_v47  ;;  %v766_v55 = vmax.f32 %v670_v49, 0.0 }
 0x150   : > { %v798_v51 = vpack.c.bf16 %v764_v45, %v764_v45 }
 0x151   : > { %v799_v2 = vpack.c.bf16 %v766_v55, %v765_v54  ;;  %v3086_v54 = vld [vmem:[#allocation10 + $0x38] sm:$0xff] }
 0x152   : > { %v1202_v53 = vunpack.c.l.b16 %v798_v51  ;;  %2044 = vmatpush.bf16.msra.mxu1 %v3086_v54 }
 0x153   : > { %v718_v56 = vpop.f32.mrf.mxu2  ;;  %v622_v60 = vpop.f32.mrf.mxu0  ;;  %v1020_v9 = vunpack.c.h.b16 %v799_v2  ;;  %v853_v11 = vunpack.c.l.b16 %v799_v2 }
 0x154   : > { %v719_v59 = vadd.f32 %v718_v56, %v3685_v63  ;;  %v1211_v61 = vpack.c.b16 %v1202_v53, %v1201_v50  ;;  %v623_v62 = vadd.f32 %v622_v60, %v3679_v57  ;;  %v671_v0 = vpop.f32.mrf.mxu1  ;;  %v3102_v53 = vld [vmem:[#allocation10 + $0xb8] sm:$0xff] }
 0x155   : > { %v672_v1 = vadd.f32 %v671_v0, %v3681_v58  ;;  %2387 = vmatpush.bf16.msra.mxu3 %v3102_v53 }
 0x156   : > { %1307 = vmatmul.bf16.gmra.mxu1 %v1211_v61  ;;  %v768_v3 = vmax.f32 %v623_v62, 0.0  ;;  %v767_v4 = vmax.f32 %v719_v59, 0.0 }
 0x157   : > { %v769_v5 = vmax.f32 %v672_v1, 0.0 }
 0x158   : > { %v800_v12 = vpack.c.bf16 %v767_v4, %v767_v4 }
 0x159   : > { %v801_v6 = vpack.c.bf16 %v769_v5, %v768_v3 }
 0x15a   : > { %v1203_v17 = vunpack.c.l.b16 %v800_v12 }
 0x15b   : > { %v720_v10 = vpop.f32.mrf.mxu2  ;;  %v854_v14 = vunpack.c.l.b16 %v801_v6  ;;  %v1021_v15 = vunpack.c.h.b16 %v801_v6 }
 0x15c   : > { %v721_v13 = vadd.f32 %v720_v10, %v3685_v63  ;;  %v3735_v63 = vld [vmem:[#allocation9 + $0x2] ss:$0 sm:$0xff] }
 0x15d   : > { %v862_v58 = vpack.c.b16 %v854_v14, %v853_v11  ;;  %v1029_v16 = vpack.c.b16 %v1021_v15, %v1020_v9 }
 0x15e   : > { %v770_v57 = vmax.f32 %v721_v13, 0.0 }
 0x15f   : > { %962 = vmatmul.bf16.gmra.mxu3 %v862_v58  ;;  %1129 = vmatmul.bf16.gmra.mxu0 %v1029_v16 }
 0x160   : > { %v802_v18 = vpack.c.bf16 %v770_v57, %v770_v57 }
 0x162   : > { %v1204_v20 = vunpack.c.l.b16 %v802_v18 }
 0x164   : > { %v1212_v21 = vpack.c.b16 %v1204_v20, %v1203_v17 }
 0x166   : > { %1312 = vmatmul.bf16.gmra.mxu1 %v1212_v21 }
 0x16c   : > { %v1095_v22 = vpop.f32.mrf.mxu0 }
 0x16d   : > { %v1096_v30 = vadd.f32 %v3737_v24, %v1095_v22 }
 0x16f   : > { %v1135_v34 = vmax.f32 %v1096_v30, 0.0 }
 0x172   : > { %v928_v25 = vpop.f32.mrf.mxu3 }
 0x173   : > { %v1278_v26 = vpop.f32.mrf.mxu1  ;;  %v929_v27 = vadd.f32 %v3733_v23, %v928_v25  ;;  %v3093_v25 = vld [vmem:[#allocation10 + $0x70] sm:$0xff] }
 0x174   : > { %v1097_v28 = vpop.f32.mrf.mxu0  ;;  %v1279_v29 = vadd.f32 %v3735_v63, %v1278_v26  ;;  %v3101_v26 = vld [vmem:[#allocation10 + $0xb0] sm:$0xff]  ;;  %2210 = vmatpush.bf16.msra.mxu2 %v3093_v25 }
 0x175   : > { %v968_v31 = vmax.f32 %v929_v27, 0.0  ;;  %v1098_v33 = vadd.f32 %v3737_v24, %v1097_v28  ;;  %v3085_v27 = vld [vmem:[#allocation10 + $0x30] sm:$0xff]  ;;  %2388 = vmatpush.bf16.msra.mxu3 %v3101_v26 }
 0x176   : > { %v1318_v32 = vmax.f32 %v1279_v29, 0.0  ;;  %2045 = vmatpush.bf16.msra.mxu1 %v3085_v27 }
 0x177   : > { %v1334_v39 = vpack.c.bf16 %v1135_v34, %v968_v31  ;;  %v1136_v42 = vmax.f32 %v1098_v33, 0.0 }
 0x178   : > { %v1335_v41 = vpack.c.bf16 %v1318_v32, %v1318_v32 }
 0x179   : > { %v1404_v47 = vunpack.c.l.b16 %v1334_v39  ;;  %v1571_v55 = vunpack.c.h.b16 %v1334_v39 }
 0x17a   : > { %v930_v35 = vpop.f32.mrf.mxu3  ;;  %v1754_v48 = vunpack.c.l.b16 %v1335_v41 }
 0x17b   : > { %v1280_v36 = vpop.f32.mrf.mxu1  ;;  %v931_v37 = vadd.f32 %v3733_v23, %v930_v35 }
 0x17c   : > { %v1281_v38 = vadd.f32 %v3735_v63, %v1280_v36  ;;  %v1100_v40 = vpop.f32.mrf.mxu0 }
 0x17d   : > { %v969_v43 = vmax.f32 %v931_v37, 0.0  ;;  %v1101_v2 = vadd.f32 %v3737_v24, %v1100_v40 }
 0x17e   : > { %v1319_v44 = vmax.f32 %v1281_v38, 0.0 }
 0x17f   : > { %v1336_v45 = vpack.c.bf16 %v1136_v42, %v969_v43  ;;  %v1137_v6 = vmax.f32 %v1101_v2, 0.0 }
 0x180   : > { %v1337_v46 = vpack.c.bf16 %v1319_v44, %v1319_v44 }
 0x181   : > { %v1405_v50 = vunpack.c.l.b16 %v1336_v45  ;;  %v1572_v51 = vunpack.c.h.b16 %v1336_v45 }
 0x182   : > { %v1755_v49 = vunpack.c.l.b16 %v1337_v46  ;;  %v933_v56 = vpop.f32.mrf.mxu3 }
 0x183   : > { %v1283_v59 = vpop.f32.mrf.mxu1  ;;  %v1420_v61 = vpack.c.b16 %v1405_v50, %v1404_v47  ;;  %v934_v62 = vadd.f32 %v3733_v23, %v933_v56  ;;  %v1587_v1 = vpack.c.b16 %v1572_v51, %v1571_v55 }
 0x184   : > { %v1770_v60 = vpack.c.b16 %v1755_v49, %v1754_v48  ;;  %v1102_v0 = vpop.f32.mrf.mxu0  ;;  %v1284_v3 = vadd.f32 %v3735_v63, %v1283_v59 }
 0x185   : > { %1492 = vmatmul.bf16.vlgmr.msrb.gmra.mxu2 %v1420_v61  ;;  %1659 = vmatmul.bf16.vlgmr.msrb.gmra.mxu3 %v1587_v1  ;;  %v970_v4 = vmax.f32 %v934_v62, 0.0  ;;  %v1103_v5 = vadd.f32 %v3737_v24, %v1102_v0  ;;  %v3092_v61 = vld [vmem:[#allocation10 + $0x68] sm:$0xff] }
 0x186   : > { %1842 = vmatmul.bf16.vlgmr.msra.gmra.mxu0 %v1770_v60  ;;  %v1320_v7 = vmax.f32 %v1284_v3, 0.0  ;;  %v3100_v62 = vld [vmem:[#allocation10 + $0xa8] sm:$0xff]  ;;  %2211 = vmatpush.bf16.msra.mxu2 %v3092_v61 }
 0x187   : > { %v1338_v12 = vpack.c.bf16 %v1137_v6, %v970_v4  ;;  %v1138_v14 = vmax.f32 %v1103_v5, 0.0  ;;  %v3084_v0 = vld [vmem:[#allocation10 + $0x28] sm:$0xff]  ;;  %2389 = vmatpush.bf16.msra.mxu3 %v3100_v62 }
 0x188   : > { %v1339_v58 = vpack.c.bf16 %v1320_v7, %v1320_v7  ;;  %2046 = vmatpush.bf16.msra.mxu1 %v3084_v0 }
 0x189   : > { %v1406_v18 = vunpack.c.l.b16 %v1338_v12  ;;  %v1573_v21 = vunpack.c.h.b16 %v1338_v12 }
 0x18a   : > { %v935_v8 = vpop.f32.mrf.mxu3  ;;  %v1756_v28 = vunpack.c.l.b16 %v1339_v58 }
 0x18b   : > { %v1285_v9 = vpop.f32.mrf.mxu1  ;;  %v936_v10 = vadd.f32 %v3733_v23, %v935_v8 }
 0x18c   : > { %v1286_v11 = vadd.f32 %v3735_v63, %v1285_v9  ;;  %v1105_v13 = vpop.f32.mrf.mxu0 }
 0x18d   : > { %v971_v15 = vmax.f32 %v936_v10, 0.0  ;;  %v1106_v36 = vadd.f32 %v3737_v24, %v1105_v13 }
 0x18e   : > { %v1321_v57 = vmax.f32 %v1286_v11, 0.0 }
 0x18f   : > { %v1340_v16 = vpack.c.bf16 %v1138_v14, %v971_v15  ;;  %v1139_v40 = vmax.f32 %v1106_v36, 0.0 }
 0x190   : > { %v1341_v17 = vpack.c.bf16 %v1321_v57, %v1321_v57 }
 0x191   : > { %v1407_v20 = vunpack.c.l.b16 %v1340_v16  ;;  %v1574_v22 = vunpack.c.h.b16 %v1340_v16 }
 0x192   : > { %v1757_v19 = vunpack.c.l.b16 %v1341_v17  ;;  %v938_v29 = vpop.f32.mrf.mxu3 }
 0x193   : > { %v1288_v30 = vpop.f32.mrf.mxu1  ;;  %v1421_v31 = vpack.c.b16 %v1407_v20, %v1406_v18  ;;  %v1588_v32 = vpack.c.b16 %v1574_v22, %v1573_v21  ;;  %v939_v33 = vadd.f32 %v3733_v23, %v938_v29 }
 0x194   : > { %v1107_v34 = vpop.f32.mrf.mxu0  ;;  %v1771_v35 = vpack.c.b16 %v1757_v19, %v1756_v28  ;;  %v1289_v37 = vadd.f32 %v3735_v63, %v1288_v30 }
 0x195   : > { %1497 = vmatmul.bf16.gmra.mxu2 %v1421_v31  ;;  %1664 = vmatmul.bf16.gmra.mxu3 %v1588_v32  ;;  %v972_v38 = vmax.f32 %v939_v33, 0.0  ;;  %v1108_v39 = vadd.f32 %v3737_v24, %v1107_v34  ;;  %v3091_v32 = vld [vmem:[#allocation10 + $0x60] sm:$0xff] }
 0x196   : > { %1847 = vmatmul.bf16.gmra.mxu0 %v1771_v35  ;;  %v1322_v41 = vmax.f32 %v1289_v37, 0.0  ;;  %v3099_v33 = vld [vmem:[#allocation10 + $0xa0] sm:$0xff]  ;;  %2212 = vmatpush.bf16.msra.mxu2 %v3091_v32 }
 0x197   : > { %v1342_v46 = vpack.c.bf16 %v1139_v40, %v972_v38  ;;  %v1140_v48 = vmax.f32 %v1108_v39, 0.0  ;;  %v3083_v34 = vld [vmem:[#allocation10 + $0x20] sm:$0xff]  ;;  %2390 = vmatpush.bf16.msra.mxu3 %v3099_v33 }
 0x198   : > { %v1343_v51 = vpack.c.bf16 %v1322_v41, %v1322_v41  ;;  %2047 = vmatpush.bf16.msra.mxu1 %v3083_v34 }
 0x199   : > { %v1408_v54 = vunpack.c.l.b16 %v1342_v46  ;;  %v1575_v59 = vunpack.c.h.b16 %v1342_v46 }
 0x19a   : > { %v940_v42 = vpop.f32.mrf.mxu3  ;;  %v1758_v1 = vunpack.c.l.b16 %v1343_v51 }
 0x19b   : > { %v1290_v43 = vpop.f32.mrf.mxu1  ;;  %v941_v44 = vadd.f32 %v3733_v23, %v940_v42 }
 0x19c   : > { %v1291_v45 = vadd.f32 %v3735_v63, %v1290_v43  ;;  %v1110_v47 = vpop.f32.mrf.mxu0 }
 0x19d   : > { %v973_v49 = vmax.f32 %v941_v44, 0.0  ;;  %v1111_v9 = vadd.f32 %v3737_v24, %v1110_v47 }
 0x19e   : > { %v1323_v50 = vmax.f32 %v1291_v45, 0.0 }
 0x19f   : > { %v1344_v52 = vpack.c.bf16 %v1140_v48, %v973_v49  ;;  %v1141_v13 = vmax.f32 %v1111_v9, 0.0 }
 0x1a0   : > { %v1345_v53 = vpack.c.bf16 %v1323_v50, %v1323_v50 }
 0x1a1   : > { %v1409_v56 = vunpack.c.l.b16 %v1344_v52  ;;  %v1576_v60 = vunpack.c.h.b16 %v1344_v52 }
 0x1a2   : > { %v1759_v55 = vunpack.c.l.b16 %v1345_v53  ;;  %v943_v2 = vpop.f32.mrf.mxu3 }
 0x1a3   : > { %v1293_v3 = vpop.f32.mrf.mxu1  ;;  %v1422_v4 = vpack.c.b16 %v1409_v56, %v1408_v54  ;;  %v1589_v5 = vpack.c.b16 %v1576_v60, %v1575_v59  ;;  %v944_v6 = vadd.f32 %v3733_v23, %v943_v2 }
 0x1a4   : > { %v1112_v7 = vpop.f32.mrf.mxu0  ;;  %v1772_v8 = vpack.c.b16 %v1759_v55, %v1758_v1  ;;  %v1294_v10 = vadd.f32 %v3735_v63, %v1293_v3 }
 0x1a5   : > { %1502 = vmatmul.bf16.gmra.mxu2 %v1422_v4  ;;  %1669 = vmatmul.bf16.gmra.mxu3 %v1589_v5  ;;  %v974_v11 = vmax.f32 %v944_v6, 0.0  ;;  %v1113_v12 = vadd.f32 %v3737_v24, %v1112_v7  ;;  %v3090_v5 = vld [vmem:[#allocation10 + $0x58] sm:$0xff] }
 0x1a6   : > { %1852 = vmatmul.bf16.gmra.mxu0 %v1772_v8  ;;  %v1324_v14 = vmax.f32 %v1294_v10, 0.0  ;;  %v3098_v6 = vld [vmem:[#allocation10 + $0x98] sm:$0xff]  ;;  %2213 = vmatpush.bf16.msra.mxu2 %v3090_v5 }
 0x1a7   : > { %v1346_v17 = vpack.c.bf16 %v1141_v13, %v974_v11  ;;  %v1142_v19 = vmax.f32 %v1113_v12, 0.0  ;;  %v3082_v7 = vld [vmem:[#allocation10 + $0x18] sm:$0xff]  ;;  %2391 = vmatpush.bf16.msra.mxu3 %v3098_v6 }
 0x1a8   : > { %v1347_v22 = vpack.c.bf16 %v1324_v14, %v1324_v14  ;;  %2048 = vmatpush.bf16.msra.mxu1 %v3082_v7 }
 0x1a9   : > { %v1410_v27 = vunpack.c.l.b16 %v1346_v17  ;;  %v1577_v30 = vunpack.c.h.b16 %v1346_v17 }
 0x1aa   : > { %v945_v15 = vpop.f32.mrf.mxu3  ;;  %v1760_v35 = vunpack.c.l.b16 %v1347_v22 }
 0x1ab   : > { %v1295_v57 = vpop.f32.mrf.mxu1  ;;  %v946_v58 = vadd.f32 %v3733_v23, %v945_v15 }
 0x1ac   : > { %v1296_v16 = vadd.f32 %v3735_v63, %v1295_v57  ;;  %v1115_v18 = vpop.f32.mrf.mxu0 }
 0x1ad   : > { %v975_v20 = vmax.f32 %v946_v58, 0.0  ;;  %v1116_v43 = vadd.f32 %v3737_v24, %v1115_v18 }
 0x1ae   : > { %v1325_v21 = vmax.f32 %v1296_v16, 0.0 }
 0x1af   : > { %v1348_v25 = vpack.c.bf16 %v1142_v19, %v975_v20  ;;  %v1143_v47 = vmax.f32 %v1116_v43, 0.0 }
 0x1b0   : > { %v1349_v26 = vpack.c.bf16 %v1325_v21, %v1325_v21 }
 0x1b1   : > { %v1411_v29 = vunpack.c.l.b16 %v1348_v25  ;;  %v1578_v31 = vunpack.c.h.b16 %v1348_v25 }
 0x1b2   : > { %v1761_v28 = vunpack.c.l.b16 %v1349_v26  ;;  %v948_v36 = vpop.f32.mrf.mxu3 }
 0x1b3   : > { %v1298_v37 = vpop.f32.mrf.mxu1  ;;  %v1423_v38 = vpack.c.b16 %v1411_v29, %v1410_v27  ;;  %v1590_v39 = vpack.c.b16 %v1578_v31, %v1577_v30  ;;  %v949_v40 = vadd.f32 %v3733_v23, %v948_v36 }
 0x1b4   : > { %v1117_v41 = vpop.f32.mrf.mxu0  ;;  %v1773_v42 = vpack.c.b16 %v1761_v28, %v1760_v35  ;;  %v1299_v44 = vadd.f32 %v3735_v63, %v1298_v37 }
 0x1b5   : > { %1507 = vmatmul.bf16.gmra.mxu2 %v1423_v38  ;;  %1674 = vmatmul.bf16.gmra.mxu3 %v1590_v39  ;;  %v976_v45 = vmax.f32 %v949_v40, 0.0  ;;  %v1118_v46 = vadd.f32 %v3737_v24, %v1117_v41  ;;  %v3089_v39 = vld [vmem:[#allocation10 + $0x50] sm:$0xff] }
 0x1b6   : > { %1857 = vmatmul.bf16.gmra.mxu0 %v1773_v42  ;;  %v1326_v48 = vmax.f32 %v1299_v44, 0.0  ;;  %v3097_v40 = vld [vmem:[#allocation10 + $0x90] sm:$0xff]  ;;  %2214 = vmatpush.bf16.msra.mxu2 %v3089_v39 }
 0x1b7   : > { %v1350_v53 = vpack.c.bf16 %v1143_v47, %v976_v45  ;;  %v1144_v55 = vmax.f32 %v1118_v46, 0.0  ;;  %v3081_v41 = vld [vmem:[#allocation10 + $0x10] sm:$0xff]  ;;  %2392 = vmatpush.bf16.msra.mxu3 %v3097_v40 }
 0x1b8   : > { %v1351_v60 = vpack.c.bf16 %v1326_v48, %v1326_v48  ;;  %2049 = vmatpush.bf16.msra.mxu1 %v3081_v41 }
 0x1b9   : > { %v1412_v0 = vunpack.c.l.b16 %v1350_v53  ;;  %v1579_v1 = vunpack.c.h.b16 %v1350_v53  ;;  %v3096_v53 = vld [vmem:[#allocation10 + $0x88] sm:$0xff] }
 0x1ba   : > { %v950_v49 = vpop.f32.mrf.mxu3  ;;  %v1762_v8 = vunpack.c.l.b16 %v1351_v60 }
 0x1bb   : > { %v1300_v50 = vpop.f32.mrf.mxu1  ;;  %v951_v51 = vadd.f32 %v3733_v23, %v950_v49  ;;  %2393 = vmatpush.bf16.msra.mxu3 %v3096_v53 }
 0x1bc   : > { %v1301_v52 = vadd.f32 %v3735_v63, %v1300_v50  ;;  %v1120_v54 = vpop.f32.mrf.mxu0 }
 0x1bd   : > { %v977_v56 = vmax.f32 %v951_v51, 0.0  ;;  %v1121_v57 = vadd.f32 %v3737_v24, %v1120_v54  ;;  %v3080_v54 = vld [vmem:[#allocation10 + $0x8] sm:$0xff] }
 0x1be   : > { %v1327_v59 = vmax.f32 %v1301_v52, 0.0  ;;  %v3088_v52 = vld [vmem:[#allocation10 + $0x48] sm:$0xff]  ;;  %2050 = vmatpush.bf16.msra.mxu1 %v3080_v54  ;;  %v3792_v54 = vld [vmem:[#allocation9 + $0x4] ss:$0 sm:$0xff] }
 0x1bf   : > { %v1352_v61 = vpack.c.bf16 %v1144_v55, %v977_v56  ;;  %v1145_v18 = vmax.f32 %v1121_v57, 0.0  ;;  %2215 = vmatpush.bf16.msra.mxu2 %v3088_v52  ;;  %v3790_v52 = vld [vmem:[#allocation9 + $0x3] ss:$0 sm:$0xff] }
 0x1c0   : > { %v1353_v62 = vpack.c.bf16 %v1327_v59, %v1327_v59 }
 0x1c1   : > { %v1413_v3 = vunpack.c.l.b16 %v1352_v61  ;;  %v1580_v4 = vunpack.c.h.b16 %v1352_v61 }
 0x1c2   : > { %v1763_v2 = vunpack.c.l.b16 %v1353_v62  ;;  %v953_v9 = vpop.f32.mrf.mxu3 }
 0x1c3   : > { %v1303_v10 = vpop.f32.mrf.mxu1  ;;  %v1424_v11 = vpack.c.b16 %v1413_v3, %v1412_v0  ;;  %v1591_v12 = vpack.c.b16 %v1580_v4, %v1579_v1  ;;  %v954_v13 = vadd.f32 %v3733_v23, %v953_v9 }
 0x1c4   : > { %v1122_v14 = vpop.f32.mrf.mxu0  ;;  %v1774_v15 = vpack.c.b16 %v1763_v2, %v1762_v8  ;;  %v1304_v58 = vadd.f32 %v3735_v63, %v1303_v10 }
 0x1c5   : > { %1512 = vmatmul.bf16.gmra.mxu2 %v1424_v11  ;;  %1679 = vmatmul.bf16.gmra.mxu3 %v1591_v12  ;;  %v978_v16 = vmax.f32 %v954_v13, 0.0  ;;  %v1123_v17 = vadd.f32 %v3737_v24, %v1122_v14 }
 0x1c6   : > { %1862 = vmatmul.bf16.gmra.mxu0 %v1774_v15  ;;  %v1328_v19 = vmax.f32 %v1304_v58, 0.0 }
 0x1c7   : > { %v1354_v26 = vpack.c.bf16 %v1145_v18, %v978_v16  ;;  %v1146_v28 = vmax.f32 %v1123_v17, 0.0 }
 0x1c8   : > { %v1355_v31 = vpack.c.bf16 %v1328_v19, %v1328_v19 }
 0x1c9   : > { %v1414_v34 = vunpack.c.l.b16 %v1354_v26  ;;  %v1581_v35 = vunpack.c.h.b16 %v1354_v26 }
 0x1ca   : > { %v955_v20 = vpop.f32.mrf.mxu3  ;;  %v1764_v42 = vunpack.c.l.b16 %v1355_v31 }
 0x1cb   : > { %v1305_v21 = vpop.f32.mrf.mxu1  ;;  %v956_v22 = vadd.f32 %v3733_v23, %v955_v20 }
 0x1cc   : > { %v1306_v25 = vadd.f32 %v3735_v63, %v1305_v21  ;;  %v1125_v27 = vpop.f32.mrf.mxu0 }
 0x1cd   : > { %v979_v29 = vmax.f32 %v956_v22, 0.0  ;;  %v1126_v50 = vadd.f32 %v3737_v24, %v1125_v27 }
 0x1ce   : > { %v1329_v30 = vmax.f32 %v1306_v25, 0.0 }
 0x1cf   : > { %v1356_v32 = vpack.c.bf16 %v1146_v28, %v979_v29  ;;  %v1147_v59 = vmax.f32 %v1126_v50, 0.0 }
 0x1d0   : > { %v1357_v33 = vpack.c.bf16 %v1329_v30, %v1329_v30 }
 0x1d1   : > { %v1415_v37 = vunpack.c.l.b16 %v1356_v32  ;;  %v1582_v38 = vunpack.c.h.b16 %v1356_v32 }
 0x1d2   : > { %v1765_v36 = vunpack.c.l.b16 %v1357_v33  ;;  %v958_v43 = vpop.f32.mrf.mxu3 }
 0x1d3   : > { %v1308_v44 = vpop.f32.mrf.mxu1  ;;  %v1425_v45 = vpack.c.b16 %v1415_v37, %v1414_v34  ;;  %v1592_v46 = vpack.c.b16 %v1582_v38, %v1581_v35  ;;  %v959_v47 = vadd.f32 %v3733_v23, %v958_v43 }
 0x1d4   : > { %v1127_v48 = vpop.f32.mrf.mxu0  ;;  %v1775_v49 = vpack.c.b16 %v1765_v36, %v1764_v42  ;;  %v1309_v51 = vadd.f32 %v3735_v63, %v1308_v44 }
 0x1d5   : > { %1517 = vmatmul.bf16.gmra.mxu2 %v1425_v45  ;;  %1684 = vmatmul.bf16.gmra.mxu3 %v1592_v46  ;;  %v980_v55 = vmax.f32 %v959_v47, 0.0  ;;  %v1128_v56 = vadd.f32 %v3737_v24, %v1127_v48  ;;  %v3095_v45 = vld [vmem:[#allocation10 + $0x80] sm:$0xff] }
 0x1d6   : > { %1867 = vmatmul.bf16.gmra.mxu0 %v1775_v49  ;;  %v1330_v60 = vmax.f32 %v1309_v51, 0.0  ;;  %2394 = vmatpush.bf16.msra.mxu3 %v3095_v45  ;;  %v3787_v49 = vld [vmem:[#allocation9 + $0x5] ss:$0 sm:$0xff] }
 0x1d7   : > { %v1358_v2 = vpack.c.bf16 %v1147_v59, %v980_v55  ;;  %v1148_v4 = vmax.f32 %v1128_v56, 0.0 }
 0x1d8   : > { %v1359_v7 = vpack.c.bf16 %v1330_v60, %v1330_v60 }
 0x1d9   : > { %v1416_v10 = vunpack.c.l.b16 %v1358_v2  ;;  %v1583_v11 = vunpack.c.h.b16 %v1358_v2 }
 0x1da   : > { %v960_v61 = vpop.f32.mrf.mxu3  ;;  %v1766_v15 = vunpack.c.l.b16 %v1359_v7 }
 0x1db   : > { %v1310_v62 = vpop.f32.mrf.mxu1  ;;  %v961_v0 = vadd.f32 %v3733_v23, %v960_v61 }
 0x1dc   : > { %v1311_v1 = vadd.f32 %v3735_v63, %v1310_v62  ;;  %v1130_v3 = vpop.f32.mrf.mxu0 }
 0x1dd   : > { %v981_v5 = vmax.f32 %v961_v0, 0.0  ;;  %v1131_v21 = vadd.f32 %v3737_v24, %v1130_v3 }
 0x1de   : > { %v1331_v6 = vmax.f32 %v1311_v1, 0.0 }
 0x1df   : > { %v1360_v8 = vpack.c.bf16 %v1148_v4, %v981_v5  ;;  %v1149_v28 = vmax.f32 %v1131_v21, 0.0 }
 0x1e0   : > { %v1361_v9 = vpack.c.bf16 %v1331_v6, %v1331_v6 }
 0x1e1   : > { %v1417_v13 = vunpack.c.l.b16 %v1360_v8  ;;  %v1584_v14 = vunpack.c.h.b16 %v1360_v8 }
 0x1e2   : > { %v1767_v12 = vunpack.c.l.b16 %v1361_v9  ;;  %v963_v57 = vpop.f32.mrf.mxu3 }
 0x1e3   : > { %v1313_v58 = vpop.f32.mrf.mxu1  ;;  %v1426_v16 = vpack.c.b16 %v1417_v13, %v1416_v10  ;;  %v1593_v17 = vpack.c.b16 %v1584_v14, %v1583_v11  ;;  %v964_v18 = vadd.f32 %v3733_v23, %v963_v57 }
 0x1e4   : > { %v1776_v19 = vpack.c.b16 %v1767_v12, %v1766_v15  ;;  %v1314_v20 = vadd.f32 %v3735_v63, %v1313_v58  ;;  %v1132_v22 = vpop.f32.mrf.mxu0 }
 0x1e5   : > { %1522 = vmatmul.bf16.gmra.mxu2 %v1426_v16  ;;  %1689 = vmatmul.bf16.gmra.mxu3 %v1593_v17  ;;  %v982_v25 = vmax.f32 %v964_v18, 0.0  ;;  %v1133_v27 = vadd.f32 %v3737_v24, %v1132_v22 }
 0x1e6   : > { %1872 = vmatmul.bf16.gmra.mxu0 %v1776_v19  ;;  %v1332_v26 = vmax.f32 %v1314_v20, 0.0 }
 0x1e7   : > { %v1362_v33 = vpack.c.bf16 %v1149_v28, %v982_v25  ;;  %v1150_v35 = vmax.f32 %v1133_v27, 0.0 }
 0x1e8   : > { %v1363_v34 = vpack.c.bf16 %v1332_v26, %v1332_v26 }
 0x1e9   : > { %v1418_v40 = vunpack.c.l.b16 %v1362_v33  ;;  %v1585_v41 = vunpack.c.h.b16 %v1362_v33 }
 0x1ea   : > { %v965_v29 = vpop.f32.mrf.mxu3  ;;  %v1768_v42 = vunpack.c.l.b16 %v1363_v34 }
 0x1eb   : > { %v1315_v30 = vpop.f32.mrf.mxu1  ;;  %v966_v31 = vadd.f32 %v3733_v23, %v965_v29  ;;  %v3087_v23 = vld [vmem:[#allocation10 + $0x40] sm:$0xff] }
 0x1ec   : > { %v1316_v32 = vadd.f32 %v3735_v63, %v1315_v30  ;;  %v3079_v63 = vld [vmem:[#allocation10] sm:$0xff]  ;;  %2216 = vmatpush.bf16.msra.mxu2 %v3087_v23 }
 0x1ed   : > { %v983_v36 = vmax.f32 %v966_v31, 0.0  ;;  %2051 = vmatpush.bf16.msra.mxu1 %v3079_v63 }
 0x1ee   : > { %v1333_v37 = vmax.f32 %v1316_v32, 0.0 }
 0x1ef   : > { %v1364_v38 = vpack.c.bf16 %v1150_v35, %v983_v36 }
 0x1f0   : > { %v1365_v39 = vpack.c.bf16 %v1333_v37, %v1333_v37 }
 0x1f1   : > { %v1419_v44 = vunpack.c.l.b16 %v1364_v38  ;;  %v1586_v24 = vunpack.c.h.b16 %v1364_v38 }
 0x1f2   : > { %v1769_v43 = vunpack.c.l.b16 %v1365_v39 }
 0x1f3   : > { %v1427_v46 = vpack.c.b16 %v1419_v44, %v1418_v40  ;;  %v1594_v47 = vpack.c.b16 %v1586_v24, %v1585_v41 }
 0x1f4   : > { %v1777_v48 = vpack.c.b16 %v1769_v43, %v1768_v42 }
 0x1f5   : > { %1527 = vmatmul.bf16.gmra.mxu2 %v1427_v46  ;;  %1694 = vmatmul.bf16.gmra.mxu3 %v1594_v47 }
 0x1f6   : > { %1877 = vmatmul.bf16.gmra.mxu0 %v1777_v48 }
 0x203   : > { %v1843_v50 = vpop.f32.mrf.mxu0 }
 0x204   : > { %v1844_v51 = vadd.f32 %v3787_v49, %v1843_v50 }
 0x206   : > { %v1883_v55 = vmax.f32 %v1844_v51, 0.0 }
 0x208   : > { %v1493_v53 = vpop.f32.mrf.mxu2  ;;  %v1660_v56 = vpop.f32.mrf.mxu3  ;;  %v1900_v0 = vpack.c.bf16 %v1883_v55, %v1883_v55 }
 0x209   : > { %v1494_v61 = vadd.f32 %v3790_v52, %v1493_v53  ;;  %v1661_v62 = vadd.f32 %v3792_v54, %v1660_v56 }
 0x20a   : > { %v2307_v6 = vunpack.c.l.b16 %v1900_v0 }
 0x20b   : > { %v1845_v59 = vpop.f32.mrf.mxu0  ;;  %v1533_v3 = vmax.f32 %v1494_v61, 0.0  ;;  %v1700_v4 = vmax.f32 %v1661_v62, 0.0 }
 0x20c   : > { %v1846_v60 = vadd.f32 %v3787_v49, %v1845_v59 }
 0x20d   : > { %v1899_v14 = vpack.c.bf16 %v1700_v4, %v1533_v3 }
 0x20e   : > { %v1884_v1 = vmax.f32 %v1846_v60, 0.0 }
 0x20f   : > { %v1964_v16 = vunpack.c.l.b16 %v1899_v14  ;;  %v2129_v17 = vunpack.c.h.b16 %v1899_v14 }
 0x210   : > { %v1902_v2 = vpack.c.bf16 %v1884_v1, %v1884_v1  ;;  %v1495_v5 = vpop.f32.mrf.mxu2  ;;  %v1662_v9 = vpop.f32.mrf.mxu3 }
 0x211   : > { %v1496_v8 = vadd.f32 %v3790_v52, %v1495_v5  ;;  %v1663_v10 = vadd.f32 %v3792_v54, %v1662_v9 }
 0x212   : > { %v2308_v7 = vunpack.c.l.b16 %v1902_v2 }
 0x213   : > { %v1534_v12 = vmax.f32 %v1496_v8, 0.0  ;;  %v1848_v13 = vpop.f32.mrf.mxu0  ;;  %v1701_v15 = vmax.f32 %v1663_v10, 0.0 }
 0x214   : > { %v2323_v11 = vpack.c.b16 %v2308_v7, %v2307_v6  ;;  %v1849_v58 = vadd.f32 %v3787_v49, %v1848_v13 }
 0x215   : > { %v1901_v57 = vpack.c.bf16 %v1701_v15, %v1534_v12 }
 0x216   : > { %2395 = vmatmul.bf16.vlgmr.msra.gmra.mxu3 %v2323_v11  ;;  %v1885_v26 = vmax.f32 %v1849_v58, 0.0 }
 0x217   : > { %v1965_v18 = vunpack.c.l.b16 %v1901_v57  ;;  %v2130_v19 = vunpack.c.h.b16 %v1901_v57 }
 0x218   : > { %v1498_v20 = vpop.f32.mrf.mxu2  ;;  %v1665_v21 = vpop.f32.mrf.mxu3  ;;  %v1904_v31 = vpack.c.bf16 %v1885_v26, %v1885_v26 }
 0x219   : > { %v1980_v22 = vpack.c.b16 %v1965_v18, %v1964_v16  ;;  %v2145_v25 = vpack.c.b16 %v2130_v19, %v2129_v17  ;;  %v1499_v28 = vadd.f32 %v3790_v52, %v1498_v20  ;;  %v1666_v29 = vadd.f32 %v3792_v54, %v1665_v21 }
 0x21a   : > { %v2309_v39 = vunpack.c.l.b16 %v1904_v31 }
 0x21b   : > { %v1850_v27 = vpop.f32.mrf.mxu0  ;;  %2052 = vmatmul.bf16.vlgmr.msra.gmra.mxu1 %v1980_v22  ;;  %2217 = vmatmul.bf16.vlgmr.msra.gmra.mxu2 %v2145_v25  ;;  %v1535_v33 = vmax.f32 %v1499_v28, 0.0  ;;  %v1702_v34 = vmax.f32 %v1666_v29, 0.0 }
 0x21c   : > { %v1851_v30 = vadd.f32 %v3787_v49, %v1850_v27 }
 0x21d   : > { %v1903_v44 = vpack.c.bf16 %v1702_v34, %v1535_v33 }
 0x21e   : > { %v1886_v32 = vmax.f32 %v1851_v30, 0.0 }
 0x21f   : > { %v1966_v48 = vunpack.c.l.b16 %v1903_v44  ;;  %v2131_v23 = vunpack.c.h.b16 %v1903_v44 }
 0x220   : > { %v1906_v35 = vpack.c.bf16 %v1886_v32, %v1886_v32  ;;  %v1500_v36 = vpop.f32.mrf.mxu2  ;;  %v1667_v38 = vpop.f32.mrf.mxu3 }
 0x221   : > { %v1501_v37 = vadd.f32 %v3790_v52, %v1500_v36  ;;  %v1668_v41 = vadd.f32 %v3792_v54, %v1667_v38 }
 0x222   : > { %v2310_v40 = vunpack.c.l.b16 %v1906_v35 }
 0x223   : > { %v1536_v42 = vmax.f32 %v1501_v37, 0.0  ;;  %v1853_v43 = vpop.f32.mrf.mxu0  ;;  %v1703_v24 = vmax.f32 %v1668_v41, 0.0 }
 0x224   : > { %v2324_v45 = vpack.c.b16 %v2310_v40, %v2309_v39  ;;  %v1854_v47 = vadd.f32 %v3787_v49, %v1853_v43 }
 0x225   : > { %v1905_v46 = vpack.c.bf16 %v1703_v24, %v1536_v42 }
 0x226   : > { %2400 = vmatmul.bf16.gmra.mxu3 %v2324_v45  ;;  %v1887_v55 = vmax.f32 %v1854_v47, 0.0 }
 0x227   : > { %v1967_v50 = vunpack.c.l.b16 %v1905_v46  ;;  %v2132_v51 = vunpack.c.h.b16 %v1905_v46 }
 0x228   : > { %v1503_v63 = vpop.f32.mrf.mxu2  ;;  %v1670_v53 = vpop.f32.mrf.mxu3  ;;  %v1908_v1 = vpack.c.bf16 %v1887_v55, %v1887_v55 }
 0x229   : > { %v1981_v56 = vpack.c.b16 %v1967_v50, %v1966_v48  ;;  %v2146_v59 = vpack.c.b16 %v2132_v51, %v2131_v23  ;;  %v1504_v61 = vadd.f32 %v3790_v52, %v1503_v63  ;;  %v1671_v62 = vadd.f32 %v3792_v54, %v1670_v53 }
 0x22a   : > { %v2311_v9 = vunpack.c.l.b16 %v1908_v1 }
 0x22b   : > { %v1855_v60 = vpop.f32.mrf.mxu0  ;;  %2057 = vmatmul.bf16.gmra.mxu1 %v1981_v56  ;;  %2222 = vmatmul.bf16.gmra.mxu2 %v2146_v59  ;;  %v1537_v3 = vmax.f32 %v1504_v61, 0.0  ;;  %v1704_v4 = vmax.f32 %v1671_v62, 0.0 }
 0x22c   : > { %v1856_v0 = vadd.f32 %v3787_v49, %v1855_v60 }
 0x22d   : > { %v1907_v14 = vpack.c.bf16 %v1704_v4, %v1537_v3 }
 0x22e   : > { %v1888_v2 = vmax.f32 %v1856_v0, 0.0 }
 0x22f   : > { %v1968_v17 = vunpack.c.l.b16 %v1907_v14  ;;  %v2133_v18 = vunpack.c.h.b16 %v1907_v14 }
 0x230   : > { %v1910_v5 = vpack.c.bf16 %v1888_v2, %v1888_v2  ;;  %v1505_v6 = vpop.f32.mrf.mxu2  ;;  %v1672_v8 = vpop.f32.mrf.mxu3 }
 0x231   : > { %v1506_v7 = vadd.f32 %v3790_v52, %v1505_v6  ;;  %v1673_v11 = vadd.f32 %v3792_v54, %v1672_v8 }
 0x232   : > { %v2312_v10 = vunpack.c.l.b16 %v1910_v5 }
 0x233   : > { %v1538_v12 = vmax.f32 %v1506_v7, 0.0  ;;  %v1858_v13 = vpop.f32.mrf.mxu0  ;;  %v1705_v15 = vmax.f32 %v1673_v11, 0.0 }
 0x234   : > { %v2325_v57 = vpack.c.b16 %v2312_v10, %v2311_v9  ;;  %v1859_v16 = vadd.f32 %v3787_v49, %v1858_v13 }
 0x235   : > { %v1909_v58 = vpack.c.bf16 %v1705_v15, %v1538_v12 }
 0x236   : > { %2405 = vmatmul.bf16.gmra.mxu3 %v2325_v57  ;;  %v1889_v25 = vmax.f32 %v1859_v16, 0.0 }
 0x237   : > { %v1969_v20 = vunpack.c.l.b16 %v1909_v58  ;;  %v2134_v21 = vunpack.c.h.b16 %v1909_v58 }
 0x238   : > { %v1508_v19 = vpop.f32.mrf.mxu2  ;;  %v1675_v22 = vpop.f32.mrf.mxu3  ;;  %v1912_v32 = vpack.c.bf16 %v1889_v25, %v1889_v25 }
 0x239   : > { %v1982_v26 = vpack.c.b16 %v1969_v20, %v1968_v17  ;;  %v2147_v27 = vpack.c.b16 %v2134_v21, %v2133_v18  ;;  %v1509_v29 = vadd.f32 %v3790_v52, %v1508_v19  ;;  %v1676_v30 = vadd.f32 %v3792_v54, %v1675_v22 }
 0x23a   : > { %v2313_v40 = vunpack.c.l.b16 %v1912_v32 }
 0x23b   : > { %v1860_v28 = vpop.f32.mrf.mxu0  ;;  %2062 = vmatmul.bf16.gmra.mxu1 %v1982_v26  ;;  %2227 = vmatmul.bf16.gmra.mxu2 %v2147_v27  ;;  %v1539_v34 = vmax.f32 %v1509_v29, 0.0  ;;  %v1706_v35 = vmax.f32 %v1676_v30, 0.0 }
 0x23c   : > { %v1861_v31 = vadd.f32 %v3787_v49, %v1860_v28 }
 0x23d   : > { %v1911_v24 = vpack.c.bf16 %v1706_v35, %v1539_v34 }
 0x23e   : > { %v1890_v33 = vmax.f32 %v1861_v31, 0.0 }
 0x23f   : > { %v1970_v23 = vunpack.c.l.b16 %v1911_v24  ;;  %v2135_v63 = vunpack.c.h.b16 %v1911_v24 }
 0x240   : > { %v1914_v36 = vpack.c.bf16 %v1890_v33, %v1890_v33  ;;  %v1510_v37 = vpop.f32.mrf.mxu2  ;;  %v1677_v39 = vpop.f32.mrf.mxu3 }
 0x241   : > { %v1511_v38 = vadd.f32 %v3790_v52, %v1510_v37  ;;  %v1678_v42 = vadd.f32 %v3792_v54, %v1677_v39 }
 0x242   : > { %v2314_v41 = vunpack.c.l.b16 %v1914_v36 }
 0x243   : > { %v1540_v43 = vmax.f32 %v1511_v38, 0.0  ;;  %v1863_v44 = vpop.f32.mrf.mxu0  ;;  %v1707_v45 = vmax.f32 %v1678_v42, 0.0 }
 0x244   : > { %v2326_v46 = vpack.c.b16 %v2314_v41, %v2313_v40  ;;  %v1864_v48 = vadd.f32 %v3787_v49, %v1863_v44 }
 0x245   : > { %v1913_v47 = vpack.c.bf16 %v1707_v45, %v1540_v43 }
 0x246   : > { %2410 = vmatmul.bf16.gmra.mxu3 %v2326_v46  ;;  %v1891_v56 = vmax.f32 %v1864_v48, 0.0 }
 0x247   : > { %v1971_v51 = vunpack.c.l.b16 %v1913_v47  ;;  %v2136_v53 = vunpack.c.h.b16 %v1913_v47 }
 0x248   : > { %v1513_v50 = vpop.f32.mrf.mxu2  ;;  %v1680_v55 = vpop.f32.mrf.mxu3  ;;  %v1916_v2 = vpack.c.bf16 %v1891_v56, %v1891_v56 }
 0x249   : > { %v1983_v59 = vpack.c.b16 %v1971_v51, %v1970_v23  ;;  %v2148_v60 = vpack.c.b16 %v2136_v53, %v2135_v63  ;;  %v1514_v62 = vadd.f32 %v3790_v52, %v1513_v50  ;;  %v1681_v0 = vadd.f32 %v3792_v54, %v1680_v55 }
 0x24a   : > { %v2315_v10 = vunpack.c.l.b16 %v1916_v2 }
 0x24b   : > { %v1865_v61 = vpop.f32.mrf.mxu0  ;;  %2067 = vmatmul.bf16.gmra.mxu1 %v1983_v59  ;;  %2232 = vmatmul.bf16.gmra.mxu2 %v2148_v60  ;;  %v1541_v4 = vmax.f32 %v1514_v62, 0.0  ;;  %v1708_v5 = vmax.f32 %v1681_v0, 0.0 }
 0x24c   : > { %v1866_v1 = vadd.f32 %v3787_v49, %v1865_v61 }
 0x24d   : > { %v1915_v15 = vpack.c.bf16 %v1708_v5, %v1541_v4 }
 0x24e   : > { %v1892_v3 = vmax.f32 %v1866_v1, 0.0 }
 0x24f   : > { %v1972_v18 = vunpack.c.l.b16 %v1915_v15  ;;  %v2137_v19 = vunpack.c.h.b16 %v1915_v15 }
 0x250   : > { %v1918_v6 = vpack.c.bf16 %v1892_v3, %v1892_v3  ;;  %v1515_v7 = vpop.f32.mrf.mxu2  ;;  %v1682_v9 = vpop.f32.mrf.mxu3 }
 0x251   : > { %v1516_v8 = vadd.f32 %v3790_v52, %v1515_v7  ;;  %v1683_v12 = vadd.f32 %v3792_v54, %v1682_v9 }
 0x252   : > { %v2316_v11 = vunpack.c.l.b16 %v1918_v6 }
 0x253   : > { %v1542_v13 = vmax.f32 %v1516_v8, 0.0  ;;  %v1868_v14 = vpop.f32.mrf.mxu0  ;;  %v1709_v57 = vmax.f32 %v1683_v12, 0.0 }
 0x254   : > { %v2327_v58 = vpack.c.b16 %v2316_v11, %v2315_v10  ;;  %v1869_v17 = vadd.f32 %v3787_v49, %v1868_v14 }
 0x255   : > { %v1917_v16 = vpack.c.bf16 %v1709_v57, %v1542_v13 }
 0x256   : > { %2415 = vmatmul.bf16.gmra.mxu3 %v2327_v58  ;;  %v1893_v26 = vmax.f32 %v1869_v17, 0.0 }
 0x257   : > { %v1973_v20 = vunpack.c.l.b16 %v1917_v16  ;;  %v2138_v21 = vunpack.c.h.b16 %v1917_v16 }
 0x258   : > { %v1518_v22 = vpop.f32.mrf.mxu2  ;;  %v1685_v25 = vpop.f32.mrf.mxu3  ;;  %v1920_v33 = vpack.c.bf16 %v1893_v26, %v1893_v26 }
 0x259   : > { %v1984_v27 = vpack.c.b16 %v1973_v20, %v1972_v18  ;;  %v2149_v28 = vpack.c.b16 %v2138_v21, %v2137_v19  ;;  %v1519_v30 = vadd.f32 %v3790_v52, %v1518_v22  ;;  %v1686_v31 = vadd.f32 %v3792_v54, %v1685_v25 }
 0x25a   : > { %v2317_v41 = vunpack.c.l.b16 %v1920_v33 }
 0x25b   : > { %v1870_v29 = vpop.f32.mrf.mxu0  ;;  %2072 = vmatmul.bf16.gmra.mxu1 %v1984_v27  ;;  %2237 = vmatmul.bf16.gmra.mxu2 %v2149_v28  ;;  %v1543_v35 = vmax.f32 %v1519_v30, 0.0  ;;  %v1710_v36 = vmax.f32 %v1686_v31, 0.0 }
 0x25c   : > { %v1871_v32 = vadd.f32 %v3787_v49, %v1870_v29 }
 0x25d   : > { %v1919_v45 = vpack.c.bf16 %v1710_v36, %v1543_v35 }
 0x25e   : > { %v1894_v34 = vmax.f32 %v1871_v32, 0.0 }
 0x25f   : > { %v1974_v63 = vunpack.c.l.b16 %v1919_v45  ;;  %v2139_v50 = vunpack.c.h.b16 %v1919_v45 }
 0x260   : > { %v1922_v37 = vpack.c.bf16 %v1894_v34, %v1894_v34  ;;  %v1520_v38 = vpop.f32.mrf.mxu2  ;;  %v1687_v40 = vpop.f32.mrf.mxu3 }
 0x261   : > { %v1521_v39 = vadd.f32 %v3790_v52, %v1520_v38  ;;  %v1688_v43 = vadd.f32 %v3792_v54, %v1687_v40 }
 0x262   : > { %v2318_v42 = vunpack.c.l.b16 %v1922_v37 }
 0x263   : > { %v1544_v44 = vmax.f32 %v1521_v39, 0.0  ;;  %v1873_v24 = vpop.f32.mrf.mxu0  ;;  %v1711_v46 = vmax.f32 %v1688_v43, 0.0 }
 0x264   : > { %v2328_v47 = vpack.c.b16 %v2318_v42, %v2317_v41  ;;  %v1874_v23 = vadd.f32 %v3787_v49, %v1873_v24 }
 0x265   : > { %v1921_v48 = vpack.c.bf16 %v1711_v46, %v1544_v44 }
 0x266   : > { %2420 = vmatmul.bf16.gmra.mxu3 %v2328_v47  ;;  %v1895_v59 = vmax.f32 %v1874_v23, 0.0 }
 0x267   : > { %v1975_v51 = vunpack.c.l.b16 %v1921_v48  ;;  %v2140_v53 = vunpack.c.h.b16 %v1921_v48 }
 0x268   : > { %v1523_v55 = vpop.f32.mrf.mxu2  ;;  %v1690_v56 = vpop.f32.mrf.mxu3  ;;  %v1924_v3 = vpack.c.bf16 %v1895_v59, %v1895_v59 }
 0x269   : > { %v1985_v60 = vpack.c.b16 %v1975_v51, %v1974_v63  ;;  %v2150_v61 = vpack.c.b16 %v2140_v53, %v2139_v50  ;;  %v1524_v0 = vadd.f32 %v3790_v52, %v1523_v55  ;;  %v1691_v1 = vadd.f32 %v3792_v54, %v1690_v56  ;;  %v3846_v56 = vld [vmem:[%s3896_s6] ss:$0 sm:$0xff] }
 0x26a   : > { %v2319_v11 = vunpack.c.l.b16 %v1924_v3 }
 0x26b   : > { %v1875_v62 = vpop.f32.mrf.mxu0  ;;  %2077 = vmatmul.bf16.gmra.mxu1 %v1985_v60  ;;  %2242 = vmatmul.bf16.gmra.mxu2 %v2150_v61  ;;  %v1545_v5 = vmax.f32 %v1524_v0, 0.0  ;;  %v1712_v6 = vmax.f32 %v1691_v1, 0.0 }
 0x26c   : > { %v1876_v2 = vadd.f32 %v3787_v49, %v1875_v62 }
 0x26d   : > { %v1923_v57 = vpack.c.bf16 %v1712_v6, %v1545_v5 }
 0x26e   : > { %v1896_v4 = vmax.f32 %v1876_v2, 0.0 }
 0x26f   : > { %v1976_v19 = vunpack.c.l.b16 %v1923_v57  ;;  %v2141_v20 = vunpack.c.h.b16 %v1923_v57 }
 0x270   : > { %v1926_v7 = vpack.c.bf16 %v1896_v4, %v1896_v4  ;;  %v1525_v8 = vpop.f32.mrf.mxu2  ;;  %v1692_v10 = vpop.f32.mrf.mxu3 }
 0x271   : > { %v1526_v9 = vadd.f32 %v3790_v52, %v1525_v8  ;;  %v1693_v13 = vadd.f32 %v3792_v54, %v1692_v10 }
 0x272   : > { %v2320_v12 = vunpack.c.l.b16 %v1926_v7 }
 0x273   : > { %v1546_v14 = vmax.f32 %v1526_v9, 0.0  ;;  %v1878_v15 = vpop.f32.mrf.mxu0  ;;  %v1713_v58 = vmax.f32 %v1693_v13, 0.0 }
 0x274   : > { %v2329_v16 = vpack.c.b16 %v2320_v12, %v2319_v11  ;;  %v1879_v18 = vadd.f32 %v3787_v49, %v1878_v15 }
 0x275   : > { %v1925_v17 = vpack.c.bf16 %v1713_v58, %v1546_v14 }
 0x276   : > { %2425 = vmatmul.bf16.gmra.mxu3 %v2329_v16  ;;  %v1897_v27 = vmax.f32 %v1879_v18, 0.0 }
 0x277   : > { %v1977_v21 = vunpack.c.l.b16 %v1925_v17  ;;  %v2142_v22 = vunpack.c.h.b16 %v1925_v17 }
 0x278   : > { %v1528_v25 = vpop.f32.mrf.mxu2  ;;  %v1695_v26 = vpop.f32.mrf.mxu3  ;;  %v1928_v34 = vpack.c.bf16 %v1897_v27, %v1897_v27 }
 0x279   : > { %v1986_v28 = vpack.c.b16 %v1977_v21, %v1976_v19  ;;  %v2151_v29 = vpack.c.b16 %v2142_v22, %v2141_v20  ;;  %v1529_v31 = vadd.f32 %v3790_v52, %v1528_v25  ;;  %v1696_v32 = vadd.f32 %v3792_v54, %v1695_v26 }
 0x27a   : > { %v2321_v42 = vunpack.c.l.b16 %v1928_v34 }
 0x27b   : > { %v1880_v30 = vpop.f32.mrf.mxu0  ;;  %2082 = vmatmul.bf16.gmra.mxu1 %v1986_v28  ;;  %2247 = vmatmul.bf16.gmra.mxu2 %v2151_v29  ;;  %v1547_v36 = vmax.f32 %v1529_v31, 0.0  ;;  %v1714_v37 = vmax.f32 %v1696_v32, 0.0 }
 0x27c   : > { %v1881_v33 = vadd.f32 %v3787_v49, %v1880_v30 }
 0x27d   : > { %v1927_v45 = vpack.c.bf16 %v1714_v37, %v1547_v36 }
 0x27e   : > { %v1898_v35 = vmax.f32 %v1881_v33, 0.0 }
 0x27f   : > { %v1978_v48 = vunpack.c.l.b16 %v1927_v45  ;;  %v2143_v23 = vunpack.c.h.b16 %v1927_v45 }
 0x280   : > { %v1930_v38 = vpack.c.bf16 %v1898_v35, %v1898_v35  ;;  %v1530_v39 = vpop.f32.mrf.mxu2  ;;  %v1697_v41 = vpop.f32.mrf.mxu3 }
 0x281   : > { %v1531_v40 = vadd.f32 %v3790_v52, %v1530_v39  ;;  %v1698_v44 = vadd.f32 %v3792_v54, %v1697_v41 }
 0x282   : > { %v2322_v43 = vunpack.c.l.b16 %v1930_v38 }
 0x283   : > { %v1548_v24 = vmax.f32 %v1531_v40, 0.0  ;;  %v1715_v46 = vmax.f32 %v1698_v44, 0.0 }
 0x284   : > { %v2330_v49 = vpack.c.b16 %v2322_v43, %v2321_v42 }
 0x285   : > { %v1929_v47 = vpack.c.bf16 %v1715_v46, %v1548_v24 }
 0x286   : > { %2430 = vmatmul.bf16.gmra.mxu3 %v2330_v49 }
 0x287   : > { %v1979_v63 = vunpack.c.l.b16 %v1929_v47  ;;  %v2144_v50 = vunpack.c.h.b16 %v1929_v47 }
 0x289   : > { %v1987_v51 = vpack.c.b16 %v1979_v63, %v1978_v48  ;;  %v2152_v53 = vpack.c.b16 %v2144_v50, %v2143_v23 }
 0x28b   : > { %2087 = vmatmul.bf16.gmra.mxu1 %v1987_v51  ;;  %2252 = vmatmul.bf16.gmra.mxu2 %v2152_v53 }
 0x298   : > { %v2053_v55 = vpop.f32.mrf.mxu1 }
 0x299   : > { %v2396_v52 = vpop.f32.mrf.mxu3  ;;  %v2096_v61 = vadd.f32 %v3846_v56, %v2053_v55 }
 0x29e   : > { %v2218_v54 = vpop.f32.mrf.mxu2 }
 0x29f   : > { %v2258_v62 = vadd.f32 %v2218_v54, %v2096_v61 }
 0x2a0   : > { %v2055_v60 = vpop.f32.mrf.mxu1 }
 0x2a1   : > { %v2398_v59 = vpop.f32.mrf.mxu3  ;;  %v2097_v0 = vadd.f32 %v3846_v56, %v2055_v60  ;;  %v2436_v5 = vadd.f32 %v2396_v52, %v2258_v62 }
 0x2a6   : > { %v2220_v1 = vpop.f32.mrf.mxu2 }
 0x2a7   : > { %v2259_v2 = vadd.f32 %v2220_v1, %v2097_v0 }
 0x2a8   : > { %v2058_v3 = vpop.f32.mrf.mxu1 }
 0x2a9   : > { %v2401_v4 = vpop.f32.mrf.mxu3  ;;  %v2437_v6 = vadd.f32 %v2398_v59, %v2259_v2  ;;  %v2098_v11 = vadd.f32 %v3846_v56, %v2058_v3 }
 0x2ab   : > { %v3106_v7 = vpack.c.bf16 %v2437_v6, %v2436_v5 }
 0x2ad   : > { %3107 = vst [vmem:[%s3853_s24] sm:$0xff] %v3106_v7  }
 0x2ae   : > { %v2223_v8 = vpop.f32.mrf.mxu2 }
 0x2af   : > { %v2260_v12 = vadd.f32 %v2223_v8, %v2098_v11 }
 0x2b0   : > { %v2060_v9 = vpop.f32.mrf.mxu1 }
 0x2b1   : > { %v2403_v10 = vpop.f32.mrf.mxu3  ;;  %v2099_v13 = vadd.f32 %v3846_v56, %v2060_v9  ;;  %v2438_v16 = vadd.f32 %v2401_v4, %v2260_v12 }
 0x2b6   : > { %v2225_v14 = vpop.f32.mrf.mxu2 }
 0x2b7   : > { %v2261_v15 = vadd.f32 %v2225_v14, %v2099_v13 }
 0x2b8   : > { %v2063_v57 = vpop.f32.mrf.mxu1 }
 0x2b9   : > { %v2406_v58 = vpop.f32.mrf.mxu3  ;;  %v2439_v17 = vadd.f32 %v2403_v10, %v2261_v15  ;;  %v2100_v22 = vadd.f32 %v3846_v56, %v2063_v57 }
 0x2bb   : > { %v3111_v18 = vpack.c.bf16 %v2439_v17, %v2438_v16 }
 0x2bd   : > { %3143 = vst [vmem:[%s3853_s24 + $0x8] sm:$0xff] %v3111_v18  }
 0x2be   : > { %v2228_v19 = vpop.f32.mrf.mxu2 }
 0x2bf   : > { %v2262_v25 = vadd.f32 %v2228_v19, %v2100_v22 }
 0x2c0   : > { %v2065_v20 = vpop.f32.mrf.mxu1 }
 0x2c1   : > { %v2408_v21 = vpop.f32.mrf.mxu3  ;;  %v2101_v26 = vadd.f32 %v3846_v56, %v2065_v20  ;;  %v2440_v31 = vadd.f32 %v2406_v58, %v2262_v25 }
 0x2c6   : > { %v2230_v27 = vpop.f32.mrf.mxu2 }
 0x2c7   : > { %v2263_v28 = vadd.f32 %v2230_v27, %v2101_v26 }
 0x2c8   : > { %v2068_v29 = vpop.f32.mrf.mxu1 }
 0x2c9   : > { %v2411_v30 = vpop.f32.mrf.mxu3  ;;  %v2441_v32 = vadd.f32 %v2408_v21, %v2263_v28  ;;  %v2102_v37 = vadd.f32 %v3846_v56, %v2068_v29 }
 0x2cb   : > { %v3116_v33 = vpack.c.bf16 %v2441_v32, %v2440_v31 }
 0x2cd   : > { %3144 = vst [vmem:[%s3853_s24 + $0x10] sm:$0xff] %v3116_v33  }
 0x2ce   : > { %v2233_v34 = vpop.f32.mrf.mxu2 }
 0x2cf   : > { %v2264_v38 = vadd.f32 %v2233_v34, %v2102_v37 }
 0x2d0   : > { %v2070_v35 = vpop.f32.mrf.mxu1 }
 0x2d1   : > { %v2413_v36 = vpop.f32.mrf.mxu3  ;;  %v2103_v39 = vadd.f32 %v3846_v56, %v2070_v35  ;;  %v2442_v44 = vadd.f32 %v2411_v30, %v2264_v38 }
 0x2d6   : > { %v2235_v40 = vpop.f32.mrf.mxu2 }
 0x2d7   : > { %v2265_v41 = vadd.f32 %v2235_v40, %v2103_v39 }
 0x2d8   : > { %v2073_v42 = vpop.f32.mrf.mxu1 }
 0x2d9   : > { %v2416_v43 = vpop.f32.mrf.mxu3  ;;  %v2443_v24 = vadd.f32 %v2413_v36, %v2265_v41  ;;  %v2104_v48 = vadd.f32 %v3846_v56, %v2073_v42 }
 0x2db   : > { %v3121_v45 = vpack.c.bf16 %v2443_v24, %v2442_v44 }
 0x2dd   : > { %3145 = vst [vmem:[%s3853_s24 + $0x18] sm:$0xff] %v3121_v45  }
 0x2de   : > { %v2238_v46 = vpop.f32.mrf.mxu2 }
 0x2df   : > { %v2266_v23 = vadd.f32 %v2238_v46, %v2104_v48 }
 0x2e0   : > { %v2075_v49 = vpop.f32.mrf.mxu1 }
 0x2e1   : > { %v2418_v47 = vpop.f32.mrf.mxu3  ;;  %v2105_v63 = vadd.f32 %v3846_v56, %v2075_v49  ;;  %v2444_v55 = vadd.f32 %v2416_v43, %v2266_v23 }
 0x2e6   : > { %v2240_v50 = vpop.f32.mrf.mxu2 }
 0x2e7   : > { %v2267_v51 = vadd.f32 %v2240_v50, %v2105_v63 }
 0x2e8   : > { %v2078_v53 = vpop.f32.mrf.mxu1 }
 0x2e9   : > { %v2421_v52 = vpop.f32.mrf.mxu3  ;;  %v2445_v54 = vadd.f32 %v2418_v47, %v2267_v51  ;;  %v2106_v0 = vadd.f32 %v3846_v56, %v2078_v53 }
 0x2eb   : > { %v3126_v59 = vpack.c.bf16 %v2445_v54, %v2444_v55 }
 0x2ed   : > { %3146 = vst [vmem:[%s3853_s24 + $0x20] sm:$0xff] %v3126_v59  }
 0x2ee   : > { %v2243_v60 = vpop.f32.mrf.mxu2 }
 0x2ef   : > { %v2268_v1 = vadd.f32 %v2243_v60, %v2106_v0 }
 0x2f0   : > { %v2080_v61 = vpop.f32.mrf.mxu1 }
 0x2f1   : > { %v2423_v62 = vpop.f32.mrf.mxu3  ;;  %v2107_v2 = vadd.f32 %v3846_v56, %v2080_v61  ;;  %v2446_v6 = vadd.f32 %v2421_v52, %v2268_v1 }
 0x2f6   : > { %v2245_v3 = vpop.f32.mrf.mxu2 }
 0x2f7   : > { %v2269_v4 = vadd.f32 %v2245_v3, %v2107_v2 }
 0x2f8   : > { %v2083_v5 = vpop.f32.mrf.mxu1 }
 0x2f9   : > { %v2447_v7 = vadd.f32 %v2423_v62, %v2269_v4  ;;  %v2426_v8 = vpop.f32.mrf.mxu3  ;;  %v2108_v12 = vadd.f32 %v3846_v56, %v2083_v5 }
 0x2fb   : > { %v3131_v9 = vpack.c.bf16 %v2447_v7, %v2446_v6 }
 0x2fd   : > { %3147 = vst [vmem:[%s3853_s24 + $0x28] sm:$0xff] %v3131_v9  }
 0x2fe   : > { %v2248_v10 = vpop.f32.mrf.mxu2 }
 0x2ff   : > { %v2270_v14 = vadd.f32 %v2248_v10, %v2108_v12 }
 0x300   : > { %v2085_v11 = vpop.f32.mrf.mxu1 }
 0x301   : > { %v2428_v13 = vpop.f32.mrf.mxu3  ;;  %v2109_v15 = vadd.f32 %v3846_v56, %v2085_v11  ;;  %v2448_v17 = vadd.f32 %v2426_v8, %v2270_v14 }
 0x306   : > { %v2250_v57 = vpop.f32.mrf.mxu2 }
 0x307   : > { %v2271_v58 = vadd.f32 %v2250_v57, %v2109_v15 }
 0x308   : > { %v2088_v16 = vpop.f32.mrf.mxu1 }
 0x309   : > { %v2449_v18 = vadd.f32 %v2428_v13, %v2271_v58  ;;  %v2431_v20 = vpop.f32.mrf.mxu3  ;;  %v2110_v25 = vadd.f32 %v3846_v56, %v2088_v16 }
 0x30b   : > { %v3136_v19 = vpack.c.bf16 %v2449_v18, %v2448_v17 }
 0x30d   : > { %3148 = vst [vmem:[%s3853_s24 + $0x30] sm:$0xff] %v3136_v19  }
 0x30e   : > { %v2253_v21 = vpop.f32.mrf.mxu2 }
 0x30f   : > { %v2272_v26 = vadd.f32 %v2253_v21, %v2110_v25 }
 0x310   : > { %v2090_v22 = vpop.f32.mrf.mxu1 }
 0x311   : > { %v2111_v27 = vadd.f32 %v3846_v56, %v2090_v22  ;;  %v2433_v30 = vpop.f32.mrf.mxu3  ;;  %v2450_v31 = vadd.f32 %v2431_v20, %v2272_v26 }
 0x316   : > { %v2255_v28 = vpop.f32.mrf.mxu2 }
 0x317   : > { %v2273_v29 = vadd.f32 %v2255_v28, %v2111_v27 }
 0x319   : > { %v2451_v32 = vadd.f32 %v2433_v30, %v2273_v29 }
 0x31b   : > { %v3141_v33 = vpack.c.bf16 %v2451_v32, %v2450_v31 }
 0x31d   : > { %3149 = vst [vmem:[%s3853_s24 + $0x38] sm:$0xff] %v3141_v33  }
 0x31e PF: > { %p20_p3 = scmp.ge.s32.totalorder %s3603_s13, 4   ;;  %s3905_s24 = smov %s3473_s25 }
 0x31f   : > { %s3906_s25 = smov %s3477_s26  ;;  %s3907_s26 = smov %s3614_s30 }
 0x320   : > { %s3908_s27 = smov %s3603_s13  ;;  %22 = sbr.rel (!%p20_p3) target bundleno = 6 (0x6), region = 120 }
 0x325   :  { %2506 = vsyncpa [#allocation3], 1 }
 0x326   :  { %2508 = vsyncpa [#allocation3 + $0x1], 1 }
 0x327   :  { %2509 = vsyncpa [#allocation5], 1 }
 0x328   :  { %2510 = vsyncpa [#allocation8], 1 }
 0x329   :  { %2511 = vsyncpa [#allocation11], 1 }

</bundles_post_ra>
